<compile_context>
chip_gen: v5e
topology: v5e:2x2
jax: 0.10.0
libtpu: 0.0.40
codegen_flags: <defaults>
</compile_context>

<pallas_src>
import functools

import numpy as np
import jax
import jax.numpy as jnp
from jax.experimental import pallas as pl
from jax.experimental.pallas import tpu as pltpu

LANE = 128


def _round_up(n, m):
    return ((n + m - 1) // m) * m


# ---------------------------------------------------------------------------
# One-time constant / parameter preparation
# ---------------------------------------------------------------------------
def _fold_conv(w_oihw, b, gamma, beta, mean, var, *, cin_pad, cout_pad, rows_pad,
               eps=1e-5):
    """Fold inference BatchNorm into the conv weight/bias; tap-major (k*cin_pad+ci)
    row layout, zero-padded to (rows_pad, cout_pad)."""
    cout, cin = w_oihw.shape[:2]
    scale = gamma / jnp.sqrt(var + eps)
    wf = w_oihw * scale[:, None, None, None]
    bf = scale * (b - mean) + beta
    wk = jnp.transpose(wf, (2, 3, 1, 0))                       # (3,3,cin,cout)
    wk = jnp.pad(wk, ((0, 0), (0, 0), (0, cin_pad - cin), (0, cout_pad - cout)))
    wm = wk.reshape(9 * cin_pad, cout_pad)
    wm = jnp.pad(wm, ((0, rows_pad - 9 * cin_pad), (0, 0))).astype(jnp.bfloat16)
    br = jnp.pad(bf, (0, cout_pad - cout)).reshape(1, cout_pad).astype(jnp.float32)
    return wm, br


def _conv2_gather_mats(H):
    """Constant (9*Hp*Hp, H*H) matrix folding AvgPool2x2 + zero-pad(1) + the 3x3
    tap gather of conv2.  Block k (rows k*Hp*Hp ...) gives, for every conv2 output
    pixel s2=h2*Hp+w2, the pooled conv1 pixel selected by tap (kh,kw)."""
    Hp = H // 2
    r2 = Hp * Hp
    A = np.zeros((9, r2, H * H), np.float32)
    for k in range(9):
        kh, kw = divmod(k, 3)
        for h2 in range(Hp):
            for w2 in range(Hp):
                hp, wp = h2 + kh - 1, w2 + kw - 1
                if 0 <= hp < Hp and 0 <= wp < Hp:
                    for dh in (0, 1):
                        for dw in (0, 1):
                            A[k, h2 * Hp + w2, (2 * hp + dh) * H + (2 * wp + dw)] = 0.25
    return A.reshape(9 * r2, H * H)


def _pool_matrix(Hp):
    """Constant (Hq*Hq, Hp*Hp) AvgPool2x2 matrix (Hq = Hp//2)."""
    Hq = Hp // 2
    P = np.zeros((Hq * Hq, Hp * Hp), np.float32)
    for hq in range(Hq):
        for wq in range(Hq):
            for dh in (0, 1):
                for dw in (0, 1):
                    P[hq * Hq + wq, (2 * hq + dh) * Hp + (2 * wq + dw)] = 0.25
    return P


def prepare_params(params, image_size, conv_width, num_channels, num_classes):
    assert image_size % 4 == 0
    H = image_size
    Hp, Hq = H // 2, H // 4
    s_out = Hq * Hq
    cpad = LANE                                   # lane-dense conv channel width
    k1p = _round_up(9 * num_channels, 8)          # conv1 patch K (27 -> 32)
    f1_out = params["fc1_w"].shape[0]
    f1p = _round_up(f1_out, LANE)
    ncp = _round_up(num_classes, LANE)

    w1m, b1r = _fold_conv(params["w1"], params["b1"], params["g1"], params["be1"],
                          params["m1"], params["v1"],
                          cin_pad=num_channels, cout_pad=cpad, rows_pad=k1p)
    w2m, b2r = _fold_conv(params["w2"], params["b2"], params["g2"], params["be2"],
                          params["m2"], params["v2"],
                          cin_pad=cpad, cout_pad=cpad, rows_pad=9 * cpad)

    a_all = jnp.asarray(_conv2_gather_mats(H), jnp.bfloat16)      # (9*Hp*Hp, H*H)
    p2 = jnp.asarray(_pool_matrix(Hp), jnp.bfloat16)              # (s_out, Hp*Hp)

    # fc1: fold Flatten()'s NCHW order (c*s_out + s) into a weight that consumes
    # our lane-dense (s*cpad + c) flattened feature.
    w = params["fc1_w"].reshape(f1_out, conv_width, s_out)        # (j, c, s)
    w = jnp.transpose(w, (2, 1, 0))                               # (s, c, j)
    w = jnp.pad(w, ((0, 0), (0, cpad - conv_width), (0, f1p - f1_out)))
    wf1 = w.reshape(s_out * cpad, f1p).astype(jnp.bfloat16)
    bf1 = jnp.pad(params["fc1_b"], (0, f1p - f1_out)).reshape(1, f1p).astype(jnp.float32)

    wf2 = jnp.pad(params["fc2_w"], ((0, ncp - num_classes),
                                    (0, f1p - f1_out))).T.astype(jnp.bfloat16)
    bf2 = jnp.pad(params["fc2_b"], (0, ncp - num_classes)).reshape(1, ncp).astype(jnp.float32)

    return dict(w1=w1m, b1=b1r, a_all=a_all, w2=w2m, b2=b2r, p2=p2,
                wf1=wf1, bf1=bf1, wf2=wf2, bf2=bf2)


# ---------------------------------------------------------------------------
# The fused kernel
# ---------------------------------------------------------------------------
def _convnet_kernel(x_ref, w1_ref, b1_ref, a_ref, w2_ref, b2_ref, p2_ref,
                    wf1_ref, bf1_ref, wf2_ref, bf2_ref, o_ref, flat_ref,
                    *, bsz, r2, s_out):
    """Per grid step: `bsz` images end-to-end (conv1 -> logits), all in VMEM.

    x_ref   : (bsz, H*W, k1p)      bf16  conv1 3x3 patches (built in the wrapper)
    w1_ref  : (k1p, 128)           bf16  folded conv1 weight
    a_ref   : (9*r2, H*W)          bf16  pool1 + pad + conv2-tap gather constant
    w2_ref  : (9*128, 128)         bf16  folded conv2 weight (tap-major rows)
    p2_ref  : (s_out, r2)          bf16  AvgPool2x2 #2 constant
    wf1_ref : (s_out*128, 128)     bf16  flatten-folded fc1 weight
    wf2_ref : (128, 128)           bf16  fc2 weight
    b*_ref  : (1, 128)             f32   biases
    o_ref   : (bsz, 1, 128)        f32   logits (lane padded)
    flat_ref: (8, s_out*128)       f32   scratch: row 0 = flattened feature
    """
    cpad = w1_ref.shape[1]
    # Rows 1..7 of the flat scratch stay zero so the fc matmuls run with M=8.
    flat_ref[...] = jnp.zeros_like(flat_ref)

    for b in range(bsz):
        # conv1 (single aligned matmul on the patch matrix) + folded BN + ReLU
        y1 = jnp.dot(x_ref[b], w1_ref[...], preferred_element_type=jnp.float32)
        y1 = jnp.maximum(y1 + b1_ref[...], 0.0).astype(jnp.bfloat16)      # (H*W, 128)

        # AvgPool2x2 + zero-pad + 3x3 tap gather, folded into one constant matmul
        u = jnp.dot(a_ref[...], y1, preferred_element_type=jnp.float32)   # (9*r2, 128)

        # conv2: 9 accumulated bf16 matmuls on sublane-aligned slices
        acc2 = None
        for k in range(9):
            uk = u[k * r2:(k + 1) * r2, :].astype(jnp.bfloat16)           # (r2, 128)
            wk = w2_ref[k * cpad:(k + 1) * cpad, :]                       # (128, 128)
            part = jnp.dot(uk, wk, preferred_element_type=jnp.float32)
            acc2 = part if acc2 is None else acc2 + part
        y2 = jnp.maximum(acc2 + b2_ref[...], 0.0).astype(jnp.bfloat16)    # (r2, 128)

        # AvgPool2x2 #2
        z = jnp.dot(p2_ref[...], y2, preferred_element_type=jnp.float32)  # (s_out, 128)

        # Flatten (NCHW order already folded into wf1): lane-dense row 0 of scratch
        for s in range(s_out):
            flat_ref[0:1, s * cpad:(s + 1) * cpad] = z[s:s + 1, :]
        flat = flat_ref[...].astype(jnp.bfloat16)                         # (8, s_out*128)

        # fc1 + ReLU + fc2  (only row 0 of the M=8 padded matmuls is meaningful)
        # TODO(synk): Dropout(p=0.5) is identity in eval/inference mode; training-mode mask not implemented.
        h1 = jnp.dot(flat, wf1_ref[...], preferred_element_type=jnp.float32)
        h1 = jnp.maximum(h1 + bf1_ref[...], 0.0).astype(jnp.bfloat16)
        logits = jnp.dot(h1, wf2_ref[...], preferred_element_type=jnp.float32) + bf2_ref[...]
        o_ref[b] = logits[0:1, :]


# ---------------------------------------------------------------------------
# Forward wrapper (single pallas_call)
# ---------------------------------------------------------------------------
@functools.partial(jax.jit, static_argnames=("num_classes", "block_n"))
def convnet_forward(x_nchw, prep, *, num_classes, block_n=1):
    N, C, H, W = x_nchw.shape
    assert H == W and H % 4 == 0 and N % block_n == 0

    # Layout plumbing in XLA: NHWC bf16 + 3x3 pad=1 patch matrix for conv1.
    x = jnp.transpose(x_nchw, (0, 2, 3, 1)).astype(jnp.bfloat16)
    xp = jnp.pad(x, ((0, 0), (1, 1), (1, 1), (0, 0)))
    pats = [xp[:, kh:kh + H, kw:kw + W, :] for kh in range(3) for kw in range(3)]
    pat = jnp.concatenate(pats, axis=-1).reshape(N, H * W, 9 * C)
    k1p = prep["w1"].shape[0]
    pat = jnp.pad(pat, ((0, 0), (0, 0), (0, k1p - 9 * C)))

    r2 = (H // 2) * (W // 2)
    s_out = (H // 4) * (W // 4)
    cpad = prep["w1"].shape[1]
    ncp = prep["wf2"].shape[1]
    B = block_n

    out = pl.pallas_call(
        functools.partial(_convnet_kernel, bsz=B, r2=r2, s_out=s_out),
        out_shape=jax.ShapeDtypeStruct((N, 1, ncp), jnp.float32),
        grid=(N // B,),
        in_specs=[
            pl.BlockSpec((B, H * W, k1p), lambda n: (n, 0, 0)),       # streamed
            pl.BlockSpec(prep["w1"].shape, lambda n: (0, 0)),         # resident ↓
            pl.BlockSpec(prep["b1"].shape, lambda n: (0, 0)),
            pl.BlockSpec(prep["a_all"].shape, lambda n: (0, 0)),
            pl.BlockSpec(prep["w2"].shape, lambda n: (0, 0)),
            pl.BlockSpec(prep["b2"].shape, lambda n: (0, 0)),
            pl.BlockSpec(prep["p2"].shape, lambda n: (0, 0)),
            pl.BlockSpec(prep["wf1"].shape, lambda n: (0, 0)),
            pl.BlockSpec(prep["bf1"].shape, lambda n: (0, 0)),
            pl.BlockSpec(prep["wf2"].shape, lambda n: (0, 0)),
            pl.BlockSpec(prep["bf2"].shape, lambda n: (0, 0)),
        ],
        out_specs=pl.BlockSpec((B, 1, ncp), lambda n: (n, 0, 0)),
        scratch_shapes=[pltpu.VMEM((8, s_out * cpad), jnp.float32)],
        compiler_params=pltpu.CompilerParams(
            dimension_semantics=("parallel",)),                       # 2 TCs on v7x
    )(pat, prep["w1"], prep["b1"], prep["a_all"], prep["w2"], prep["b2"],
      prep["p2"], prep["wf1"], prep["bf1"], prep["wf2"], prep["bf2"])

    return out.reshape(N, ncp)[:, :num_classes]


# ---------------------------------------------------------------------------
# Pure-JAX f32 reference (PyTorch semantics, eval mode) + synthetic params
# ---------------------------------------------------------------------------
def reference_forward(x, p, eps=1e-5):
    def block(x, w, b, g, be, m, v):
        y = jax.lax.conv_general_dilated(
            x, w, window_strides=(1, 1), padding=((1, 1), (1, 1)),
            dimension_numbers=("NCHW", "OIHW", "NCHW"),
            precision=jax.lax.Precision.HIGHEST)
        y = y + b[None, :, None, None]
        y = (y - m[None, :, None, None]) / jnp.sqrt(v[None, :, None, None] + eps)
        y = y * g[None, :, None, None] + be[None, :, None, None]
        y = jnp.maximum(y, 0.0)
        n_, c_, h_, w_ = y.shape
        return y.reshape(n_, c_, h_ // 2, 2, w_ // 2, 2).mean(axis=(3, 5))

    y = block(x, p["w1"], p["b1"], p["g1"], p["be1"], p["m1"], p["v1"])
    y = block(y, p["w2"], p["b2"], p["g2"], p["be2"], p["m2"], p["v2"])
    y = y.reshape(y.shape[0], -1)
    h = jnp.maximum(jnp.dot(y, p["fc1_w"].T, precision=jax.lax.Precision.HIGHEST)
                    + p["fc1_b"], 0.0)
    return jnp.dot(h, p["fc2_w"].T, precision=jax.lax.Precision.HIGHEST) + p["fc2_b"]


def init_params(key, num_classes, image_size, ch, num_channels):
    """Deterministic synthetic parameters matching ConvNet.__init__ shapes.
    `ch` corresponds to the module's (oddly named) `batch_size` arg = conv width."""
    w = h = image_size // 4
    fc1_in = ch * w * h
    fc1_out = ch * w // 2 * h // 2            # same integer arithmetic as the module
    ks = jax.random.split(key, 16)
    n = lambda k, s, sc: sc * jax.random.normal(k, s, jnp.float32)
    return {
        "w1": n(ks[0], (ch, num_channels, 3, 3), 0.25),
        "b1": n(ks[1], (ch,), 0.1),
        "g1": 1.0 + n(ks[2], (ch,), 0.1),
        "be1": n(ks[3], (ch,), 0.1),
        "m1": n(ks[4], (ch,), 0.1),
        "v1": 1.0 + jnp.abs(n(ks[5], (ch,), 0.1)),
        "w2": n(ks[6], (ch, ch, 3, 3), 0.25),
        "b2": n(ks[7], (ch,), 0.1),
        "g2": 1.0 + n(ks[8], (ch,), 0.1),
        "be2": n(ks[9], (ch,), 0.1),
        "m2": n(ks[10], (ch,), 0.1),
        "v2": 1.0 + jnp.abs(n(ks[11], (ch,), 0.1)),
        "fc1_w": n(ks[12], (fc1_out, fc1_in), 0.25),
        "fc1_b": n(ks[13], (fc1_out,), 0.1),
        "fc2_w": n(ks[14], (num_classes, fc1_out), 0.25),
        "fc2_b": n(ks[15], (num_classes,), 0.1),
    }


if __name__ == "__main__":
    # Module-consistent shapes: num_classes=10, image_size=16,
    # module "batch_size" (conv width)=8, num_channels=3, actual input batch N=2.
    num_classes, image_size, conv_width, num_channels = 10, 16, 8, 3
    N = 2

    key = jax.random.PRNGKey(0)
    k_x, k_p = jax.random.split(key)
    x = jax.random.normal(k_x, (N, num_channels, image_size, image_size), jnp.float32)
    params = init_params(k_p, num_classes, image_size, conv_width, num_channels)
    prep = prepare_params(params, image_size, conv_width, num_channels, num_classes)

    out = convnet_forward(x, prep, num_classes=num_classes, block_n=1)
    out = jax.block_until_ready(out)
    assert out.shape == (N, num_classes), out.shape
    assert np.all(np.isfinite(np.asarray(out)))

    # Tolerance check vs a pure-JAX f32 reference (bf16 MXU -> ~1% drift expected).
    ref = np.asarray(reference_forward(x, params))
    np.testing.assert_allclose(np.asarray(out), ref, rtol=0.1, atol=0.15)

    print("KERNEL_OK")
</pallas_src>

<mosaic_0001>
module attributes {stable_mosaic.version = 11 : i64} {
  func.func @_convnet_kernel(%arg0: i32, %arg1: memref<1x256x32xbf16, #tpu.memory_space<vmem>>, %arg2: memref<32x128xbf16, #tpu.memory_space<vmem>>, %arg3: memref<1x128xf32, #tpu.memory_space<vmem>>, %arg4: memref<576x256xbf16, #tpu.memory_space<vmem>>, %arg5: memref<1152x128xbf16, #tpu.memory_space<vmem>>, %arg6: memref<1x128xf32, #tpu.memory_space<vmem>>, %arg7: memref<16x64xbf16, #tpu.memory_space<vmem>>, %arg8: memref<2048x128xbf16, #tpu.memory_space<vmem>>, %arg9: memref<1x128xf32, #tpu.memory_space<vmem>>, %arg10: memref<128x128xbf16, #tpu.memory_space<vmem>>, %arg11: memref<1x128xf32, #tpu.memory_space<vmem>>, %arg12: memref<1x1x128xf32, #tpu.memory_space<vmem>>, %arg13: memref<8x2048xf32, #tpu.memory_space<vmem>>) attributes {dimension_semantics = [#tpu.dimension_semantics<parallel>], iteration_bounds = array<i64: 2>, scalar_prefetch = 0 : i64, scratch_operands = 1 : i64, tpu.core_type = #tpu.core_type<tc>, window_params = [{transform_indices = @transform_0, window_bounds = array<i64: 1, 256, 32>}, {pipeline_mode = #tpu.pipeline_mode<synchronous>, transform_indices = @transform_1, window_bounds = array<i64: 32, 128>}, {pipeline_mode = #tpu.pipeline_mode<synchronous>, transform_indices = @transform_2, window_bounds = array<i64: 1, 128>}, {pipeline_mode = #tpu.pipeline_mode<synchronous>, transform_indices = @transform_3, window_bounds = array<i64: 576, 256>}, {pipeline_mode = #tpu.pipeline_mode<synchronous>, transform_indices = @transform_4, window_bounds = array<i64: 1152, 128>}, {pipeline_mode = #tpu.pipeline_mode<synchronous>, transform_indices = @transform_5, window_bounds = array<i64: 1, 128>}, {pipeline_mode = #tpu.pipeline_mode<synchronous>, transform_indices = @transform_6, window_bounds = array<i64: 16, 64>}, {pipeline_mode = #tpu.pipeline_mode<synchronous>, transform_indices = @transform_7, window_bounds = array<i64: 2048, 128>}, {pipeline_mode = #tpu.pipeline_mode<synchronous>, transform_indices = @transform_8, window_bounds = array<i64: 1, 128>}, {pipeline_mode = #tpu.pipeline_mode<synchronous>, transform_indices = @transform_9, window_bounds = array<i64: 128, 128>}, {pipeline_mode = #tpu.pipeline_mode<synchronous>, transform_indices = @transform_10, window_bounds = array<i64: 1, 128>}, {transform_indices = @transform_11, window_bounds = array<i64: 1, 1, 128>}]} {
    %cst = arith.constant 0.000000e+00 : f32
    %0 = vector.broadcast %cst : f32 to vector<8x2048xf32>
    %c0 = arith.constant 0 : index
    %c0_0 = arith.constant 0 : index
    %1 = vector.load %arg13[%c0, %c0_0] : memref<8x2048xf32, #tpu.memory_space<vmem>>, vector<8x2048xf32>
    tpu.vector_store %arg13[%c0, %c0_0], %0 {strides = array<i32>} : memref<8x2048xf32, #tpu.memory_space<vmem>>, vector<8x2048xf32>,
    %c0_1 = arith.constant 0 : index
    %c0_2 = arith.constant 0 : index
    %c0_3 = arith.constant 0 : index
    %2 = vector.load %arg1[%c0_1, %c0_2, %c0_3] : memref<1x256x32xbf16, #tpu.memory_space<vmem>>, vector<1x256x32xbf16>
    %3 = vector.shape_cast %2 : vector<1x256x32xbf16> to vector<256x32xbf16>
    %c0_4 = arith.constant 0 : index
    %c0_5 = arith.constant 0 : index
    %4 = vector.load %arg2[%c0_4, %c0_5] : memref<32x128xbf16, #tpu.memory_space<vmem>>, vector<32x128xbf16>
    %cst_6 = arith.constant dense<0.000000e+00> : vector<256x128xf32>
    %5 = tpu.matmul %3, %4, %cst_6 {dimension_numbers = #tpu.dot_dimension_numbers<[1], [0], [0], [1], [0, 0, 1, 1], [], []>} : vector<256x32xbf16>, vector<32x128xbf16>, vector<256x128xf32> -> vector<256x128xf32>
    %c0_7 = arith.constant 0 : index
    %c0_8 = arith.constant 0 : index
    %6 = vector.load %arg3[%c0_7, %c0_8] : memref<1x128xf32, #tpu.memory_space<vmem>>, vector<1x128xf32>
    %7 = vector.broadcast %6 : vector<1x128xf32> to vector<256x128xf32>
    %8 = arith.addf %5, %7 : vector<256x128xf32>
    %cst_9 = arith.constant 0.000000e+00 : f32
    %9 = vector.broadcast %cst_9 : f32 to vector<256x128xf32>
    %10 = arith.maximumf %8, %9 : vector<256x128xf32>
    %11 = arith.truncf %10 : vector<256x128xf32> to vector<256x128xbf16>
    %c0_10 = arith.constant 0 : index
    %c0_11 = arith.constant 0 : index
    %12 = vector.load %arg4[%c0_10, %c0_11] : memref<576x256xbf16, #tpu.memory_space<vmem>>, vector<576x256xbf16>
    %cst_12 = arith.constant dense<0.000000e+00> : vector<576x128xf32>
    %13 = tpu.matmul %12, %11, %cst_12 {dimension_numbers = #tpu.dot_dimension_numbers<[1], [0], [0], [1], [0, 0, 1, 1], [], []>} : vector<576x256xbf16>, vector<256x128xbf16>, vector<576x128xf32> -> vector<576x128xf32>
    %14 = vector.extract_strided_slice %13 {offsets = [0, 0], sizes = [64, 128], strides = [1, 1]} : vector<576x128xf32> to vector<64x128xf32>
    %15 = arith.truncf %14 : vector<64x128xf32> to vector<64x128xbf16>
    %c0_13 = arith.constant 0 : index
    %c0_14 = arith.constant 0 : index
    %16 = vector.load %arg5[%c0_13, %c0_14] : memref<1152x128xbf16, #tpu.memory_space<vmem>>, vector<128x128xbf16>
    %cst_15 = arith.constant dense<0.000000e+00> : vector<64x128xf32>
    %17 = tpu.matmul %15, %16, %cst_15 {dimension_numbers = #tpu.dot_dimension_numbers<[1], [0], [0], [1], [0, 0, 1, 1], [], []>} : vector<64x128xbf16>, vector<128x128xbf16>, vector<64x128xf32> -> vector<64x128xf32>
    %18 = vector.extract_strided_slice %13 {offsets = [64, 0], sizes = [64, 128], strides = [1, 1]} : vector<576x128xf32> to vector<64x128xf32>
    %19 = arith.truncf %18 : vector<64x128xf32> to vector<64x128xbf16>
    %c128 = arith.constant 128 : index
    %c0_16 = arith.constant 0 : index
    %20 = vector.load %arg5[%c128, %c0_16] : memref<1152x128xbf16, #tpu.memory_space<vmem>>, vector<128x128xbf16>
    %cst_17 = arith.constant dense<0.000000e+00> : vector<64x128xf32>
    %21 = tpu.matmul %19, %20, %cst_17 {dimension_numbers = #tpu.dot_dimension_numbers<[1], [0], [0], [1], [0, 0, 1, 1], [], []>} : vector<64x128xbf16>, vector<128x128xbf16>, vector<64x128xf32> -> vector<64x128xf32>
    %22 = arith.addf %17, %21 : vector<64x128xf32>
    %23 = vector.extract_strided_slice %13 {offsets = [128, 0], sizes = [64, 128], strides = [1, 1]} : vector<576x128xf32> to vector<64x128xf32>
    %24 = arith.truncf %23 : vector<64x128xf32> to vector<64x128xbf16>
    %c256 = arith.constant 256 : index
    %c0_18 = arith.constant 0 : index
    %25 = vector.load %arg5[%c256, %c0_18] : memref<1152x128xbf16, #tpu.memory_space<vmem>>, vector<128x128xbf16>
    %cst_19 = arith.constant dense<0.000000e+00> : vector<64x128xf32>
    %26 = tpu.matmul %24, %25, %cst_19 {dimension_numbers = #tpu.dot_dimension_numbers<[1], [0], [0], [1], [0, 0, 1, 1], [], []>} : vector<64x128xbf16>, vector<128x128xbf16>, vector<64x128xf32> -> vector<64x128xf32>
    %27 = arith.addf %22, %26 : vector<64x128xf32>
    %28 = vector.extract_strided_slice %13 {offsets = [192, 0], sizes = [64, 128], strides = [1, 1]} : vector<576x128xf32> to vector<64x128xf32>
    %29 = arith.truncf %28 : vector<64x128xf32> to vector<64x128xbf16>
    %c384 = arith.constant 384 : index
    %c0_20 = arith.constant 0 : index
    %30 = vector.load %arg5[%c384, %c0_20] : memref<1152x128xbf16, #tpu.memory_space<vmem>>, vector<128x128xbf16>
    %cst_21 = arith.constant dense<0.000000e+00> : vector<64x128xf32>
    %31 = tpu.matmul %29, %30, %cst_21 {dimension_numbers = #tpu.dot_dimension_numbers<[1], [0], [0], [1], [0, 0, 1, 1], [], []>} : vector<64x128xbf16>, vector<128x128xbf16>, vector<64x128xf32> -> vector<64x128xf32>
    %32 = arith.addf %27, %31 : vector<64x128xf32>
    %33 = vector.extract_strided_slice %13 {offsets = [256, 0], sizes = [64, 128], strides = [1, 1]} : vector<576x128xf32> to vector<64x128xf32>
    %34 = arith.truncf %33 : vector<64x128xf32> to vector<64x128xbf16>
    %c512 = arith.constant 512 : index
    %c0_22 = arith.constant 0 : index
    %35 = vector.load %arg5[%c512, %c0_22] : memref<1152x128xbf16, #tpu.memory_space<vmem>>, vector<128x128xbf16>
    %cst_23 = arith.constant dense<0.000000e+00> : vector<64x128xf32>
    %36 = tpu.matmul %34, %35, %cst_23 {dimension_numbers = #tpu.dot_dimension_numbers<[1], [0], [0], [1], [0, 0, 1, 1], [], []>} : vector<64x128xbf16>, vector<128x128xbf16>, vector<64x128xf32> -> vector<64x128xf32>
    %37 = arith.addf %32, %36 : vector<64x128xf32>
    %38 = vector.extract_strided_slice %13 {offsets = [320, 0], sizes = [64, 128], strides = [1, 1]} : vector<576x128xf32> to vector<64x128xf32>
    %39 = arith.truncf %38 : vector<64x128xf32> to vector<64x128xbf16>
    %c640 = arith.constant 640 : index
    %c0_24 = arith.constant 0 : index
    %40 = vector.load %arg5[%c640, %c0_24] : memref<1152x128xbf16, #tpu.memory_space<vmem>>, vector<128x128xbf16>
    %cst_25 = arith.constant dense<0.000000e+00> : vector<64x128xf32>
    %41 = tpu.matmul %39, %40, %cst_25 {dimension_numbers = #tpu.dot_dimension_numbers<[1], [0], [0], [1], [0, 0, 1, 1], [], []>} : vector<64x128xbf16>, vector<128x128xbf16>, vector<64x128xf32> -> vector<64x128xf32>
    %42 = arith.addf %37, %41 : vector<64x128xf32>
    %43 = vector.extract_strided_slice %13 {offsets = [384, 0], sizes = [64, 128], strides = [1, 1]} : vector<576x128xf32> to vector<64x128xf32>
    %44 = arith.truncf %43 : vector<64x128xf32> to vector<64x128xbf16>
    %c768 = arith.constant 768 : index
    %c0_26 = arith.constant 0 : index
    %45 = vector.load %arg5[%c768, %c0_26] : memref<1152x128xbf16, #tpu.memory_space<vmem>>, vector<128x128xbf16>
    %cst_27 = arith.constant dense<0.000000e+00> : vector<64x128xf32>
    %46 = tpu.matmul %44, %45, %cst_27 {dimension_numbers = #tpu.dot_dimension_numbers<[1], [0], [0], [1], [0, 0, 1, 1], [], []>} : vector<64x128xbf16>, vector<128x128xbf16>, vector<64x128xf32> -> vector<64x128xf32>
    %47 = arith.addf %42, %46 : vector<64x128xf32>
    %48 = vector.extract_strided_slice %13 {offsets = [448, 0], sizes = [64, 128], strides = [1, 1]} : vector<576x128xf32> to vector<64x128xf32>
    %49 = arith.truncf %48 : vector<64x128xf32> to vector<64x128xbf16>
    %c896 = arith.constant 896 : index
    %c0_28 = arith.constant 0 : index
    %50 = vector.load %arg5[%c896, %c0_28] : memref<1152x128xbf16, #tpu.memory_space<vmem>>, vector<128x128xbf16>
    %cst_29 = arith.constant dense<0.000000e+00> : vector<64x128xf32>
    %51 = tpu.matmul %49, %50, %cst_29 {dimension_numbers = #tpu.dot_dimension_numbers<[1], [0], [0], [1], [0, 0, 1, 1], [], []>} : vector<64x128xbf16>, vector<128x128xbf16>, vector<64x128xf32> -> vector<64x128xf32>
    %52 = arith.addf %47, %51 : vector<64x128xf32>
    %53 = vector.extract_strided_slice %13 {offsets = [512, 0], sizes = [64, 128], strides = [1, 1]} : vector<576x128xf32> to vector<64x128xf32>
    %54 = arith.truncf %53 : vector<64x128xf32> to vector<64x128xbf16>
    %c1024 = arith.constant 1024 : index
    %c0_30 = arith.constant 0 : index
    %55 = vector.load %arg5[%c1024, %c0_30] : memref<1152x128xbf16, #tpu.memory_space<vmem>>, vector<128x128xbf16>
    %cst_31 = arith.constant dense<0.000000e+00> : vector<64x128xf32>
    %56 = tpu.matmul %54, %55, %cst_31 {dimension_numbers = #tpu.dot_dimension_numbers<[1], [0], [0], [1], [0, 0, 1, 1], [], []>} : vector<64x128xbf16>, vector<128x128xbf16>, vector<64x128xf32> -> vector<64x128xf32>
    %57 = arith.addf %52, %56 : vector<64x128xf32>
    %c0_32 = arith.constant 0 : index
    %c0_33 = arith.constant 0 : index
    %58 = vector.load %arg6[%c0_32, %c0_33] : memref<1x128xf32, #tpu.memory_space<vmem>>, vector<1x128xf32>
    %59 = vector.broadcast %58 : vector<1x128xf32> to vector<64x128xf32>
    %60 = arith.addf %57, %59 : vector<64x128xf32>
    %cst_34 = arith.constant 0.000000e+00 : f32
    %61 = vector.broadcast %cst_34 : f32 to vector<64x128xf32>
    %62 = arith.maximumf %60, %61 : vector<64x128xf32>
    %63 = arith.truncf %62 : vector<64x128xf32> to vector<64x128xbf16>
    %c0_35 = arith.constant 0 : index
    %c0_36 = arith.constant 0 : index
    %64 = vector.load %arg7[%c0_35, %c0_36] : memref<16x64xbf16, #tpu.memory_space<vmem>>, vector<16x64xbf16>
    %cst_37 = arith.constant dense<0.000000e+00> : vector<16x128xf32>
    %65 = tpu.matmul %64, %63, %cst_37 {dimension_numbers = #tpu.dot_dimension_numbers<[1], [0], [0], [1], [0, 0, 1, 1], [], []>} : vector<16x64xbf16>, vector<64x128xbf16>, vector<16x128xf32> -> vector<16x128xf32>
    %66 = vector.extract_strided_slice %65 {offsets = [0, 0], sizes = [1, 128], strides = [1, 1]} : vector<16x128xf32> to vector<1x128xf32>
    %c0_38 = arith.constant 0 : index
    %c0_39 = arith.constant 0 : index
    %67 = vector.load %arg13[%c0_38, %c0_39] : memref<8x2048xf32, #tpu.memory_space<vmem>>, vector<1x128xf32>
    tpu.vector_store %arg13[%c0_38, %c0_39], %66 {strides = array<i32>} : memref<8x2048xf32, #tpu.memory_space<vmem>>, vector<1x128xf32>,
    %68 = vector.extract_strided_slice %65 {offsets = [1, 0], sizes = [1, 128], strides = [1, 1]} : vector<16x128xf32> to vector<1x128xf32>
    %c0_40 = arith.constant 0 : index
    %c128_41 = arith.constant 128 : index
    %69 = vector.load %arg13[%c0_40, %c128_41] : memref<8x2048xf32, #tpu.memory_space<vmem>>, vector<1x128xf32>
    tpu.vector_store %arg13[%c0_40, %c128_41], %68 {strides = array<i32>} : memref<8x2048xf32, #tpu.memory_space<vmem>>, vector<1x128xf32>,
    %70 = vector.extract_strided_slice %65 {offsets = [2, 0], sizes = [1, 128], strides = [1, 1]} : vector<16x128xf32> to vector<1x128xf32>
    %c0_42 = arith.constant 0 : index
    %c256_43 = arith.constant 256 : index
    %71 = vector.load %arg13[%c0_42, %c256_43] : memref<8x2048xf32, #tpu.memory_space<vmem>>, vector<1x128xf32>
    tpu.vector_store %arg13[%c0_42, %c256_43], %70 {strides = array<i32>} : memref<8x2048xf32, #tpu.memory_space<vmem>>, vector<1x128xf32>,
    %72 = vector.extract_strided_slice %65 {offsets = [3, 0], sizes = [1, 128], strides = [1, 1]} : vector<16x128xf32> to vector<1x128xf32>
    %c0_44 = arith.constant 0 : index
    %c384_45 = arith.constant 384 : index
    %73 = vector.load %arg13[%c0_44, %c384_45] : memref<8x2048xf32, #tpu.memory_space<vmem>>, vector<1x128xf32>
    tpu.vector_store %arg13[%c0_44, %c384_45], %72 {strides = array<i32>} : memref<8x2048xf32, #tpu.memory_space<vmem>>, vector<1x128xf32>,
    %74 = vector.extract_strided_slice %65 {offsets = [4, 0], sizes = [1, 128], strides = [1, 1]} : vector<16x128xf32> to vector<1x128xf32>
    %c0_46 = arith.constant 0 : index
    %c512_47 = arith.constant 512 : index
    %75 = vector.load %arg13[%c0_46, %c512_47] : memref<8x2048xf32, #tpu.memory_space<vmem>>, vector<1x128xf32>
    tpu.vector_store %arg13[%c0_46, %c512_47], %74 {strides = array<i32>} : memref<8x2048xf32, #tpu.memory_space<vmem>>, vector<1x128xf32>,
    %76 = vector.extract_strided_slice %65 {offsets = [5, 0], sizes = [1, 128], strides = [1, 1]} : vector<16x128xf32> to vector<1x128xf32>
    %c0_48 = arith.constant 0 : index
    %c640_49 = arith.constant 640 : index
    %77 = vector.load %arg13[%c0_48, %c640_49] : memref<8x2048xf32, #tpu.memory_space<vmem>>, vector<1x128xf32>
    tpu.vector_store %arg13[%c0_48, %c640_49], %76 {strides = array<i32>} : memref<8x2048xf32, #tpu.memory_space<vmem>>, vector<1x128xf32>,
    %78 = vector.extract_strided_slice %65 {offsets = [6, 0], sizes = [1, 128], strides = [1, 1]} : vector<16x128xf32> to vector<1x128xf32>
    %c0_50 = arith.constant 0 : index
    %c768_51 = arith.constant 768 : index
    %79 = vector.load %arg13[%c0_50, %c768_51] : memref<8x2048xf32, #tpu.memory_space<vmem>>, vector<1x128xf32>
    tpu.vector_store %arg13[%c0_50, %c768_51], %78 {strides = array<i32>} : memref<8x2048xf32, #tpu.memory_space<vmem>>, vector<1x128xf32>,
    %80 = vector.extract_strided_slice %65 {offsets = [7, 0], sizes = [1, 128], strides = [1, 1]} : vector<16x128xf32> to vector<1x128xf32>
    %c0_52 = arith.constant 0 : index
    %c896_53 = arith.constant 896 : index
    %81 = vector.load %arg13[%c0_52, %c896_53] : memref<8x2048xf32, #tpu.memory_space<vmem>>, vector<1x128xf32>
    tpu.vector_store %arg13[%c0_52, %c896_53], %80 {strides = array<i32>} : memref<8x2048xf32, #tpu.memory_space<vmem>>, vector<1x128xf32>,
    %82 = vector.extract_strided_slice %65 {offsets = [8, 0], sizes = [1, 128], strides = [1, 1]} : vector<16x128xf32> to vector<1x128xf32>
    %c0_54 = arith.constant 0 : index
    %c1024_55 = arith.constant 1024 : index
    %83 = vector.load %arg13[%c0_54, %c1024_55] : memref<8x2048xf32, #tpu.memory_space<vmem>>, vector<1x128xf32>
    tpu.vector_store %arg13[%c0_54, %c1024_55], %82 {strides = array<i32>} : memref<8x2048xf32, #tpu.memory_space<vmem>>, vector<1x128xf32>,
    %84 = vector.extract_strided_slice %65 {offsets = [9, 0], sizes = [1, 128], strides = [1, 1]} : vector<16x128xf32> to vector<1x128xf32>
    %c0_56 = arith.constant 0 : index
    %c1152 = arith.constant 1152 : index
    %85 = vector.load %arg13[%c0_56, %c1152] : memref<8x2048xf32, #tpu.memory_space<vmem>>, vector<1x128xf32>
    tpu.vector_store %arg13[%c0_56, %c1152], %84 {strides = array<i32>} : memref<8x2048xf32, #tpu.memory_space<vmem>>, vector<1x128xf32>,
    %86 = vector.extract_strided_slice %65 {offsets = [10, 0], sizes = [1, 128], strides = [1, 1]} : vector<16x128xf32> to vector<1x128xf32>
    %c0_57 = arith.constant 0 : index
    %c1280 = arith.constant 1280 : index
    %87 = vector.load %arg13[%c0_57, %c1280] : memref<8x2048xf32, #tpu.memory_space<vmem>>, vector<1x128xf32>
    tpu.vector_store %arg13[%c0_57, %c1280], %86 {strides = array<i32>} : memref<8x2048xf32, #tpu.memory_space<vmem>>, vector<1x128xf32>,
    %88 = vector.extract_strided_slice %65 {offsets = [11, 0], sizes = [1, 128], strides = [1, 1]} : vector<16x128xf32> to vector<1x128xf32>
    %c0_58 = arith.constant 0 : index
    %c1408 = arith.constant 1408 : index
    %89 = vector.load %arg13[%c0_58, %c1408] : memref<8x2048xf32, #tpu.memory_space<vmem>>, vector<1x128xf32>
    tpu.vector_store %arg13[%c0_58, %c1408], %88 {strides = array<i32>} : memref<8x2048xf32, #tpu.memory_space<vmem>>, vector<1x128xf32>,
    %90 = vector.extract_strided_slice %65 {offsets = [12, 0], sizes = [1, 128], strides = [1, 1]} : vector<16x128xf32> to vector<1x128xf32>
    %c0_59 = arith.constant 0 : index
    %c1536 = arith.constant 1536 : index
    %91 = vector.load %arg13[%c0_59, %c1536] : memref<8x2048xf32, #tpu.memory_space<vmem>>, vector<1x128xf32>
    tpu.vector_store %arg13[%c0_59, %c1536], %90 {strides = array<i32>} : memref<8x2048xf32, #tpu.memory_space<vmem>>, vector<1x128xf32>,
    %92 = vector.extract_strided_slice %65 {offsets = [13, 0], sizes = [1, 128], strides = [1, 1]} : vector<16x128xf32> to vector<1x128xf32>
    %c0_60 = arith.constant 0 : index
    %c1664 = arith.constant 1664 : index
    %93 = vector.load %arg13[%c0_60, %c1664] : memref<8x2048xf32, #tpu.memory_space<vmem>>, vector<1x128xf32>
    tpu.vector_store %arg13[%c0_60, %c1664], %92 {strides = array<i32>} : memref<8x2048xf32, #tpu.memory_space<vmem>>, vector<1x128xf32>,
    %94 = vector.extract_strided_slice %65 {offsets = [14, 0], sizes = [1, 128], strides = [1, 1]} : vector<16x128xf32> to vector<1x128xf32>
    %c0_61 = arith.constant 0 : index
    %c1792 = arith.constant 1792 : index
    %95 = vector.load %arg13[%c0_61, %c1792] : memref<8x2048xf32, #tpu.memory_space<vmem>>, vector<1x128xf32>
    tpu.vector_store %arg13[%c0_61, %c1792], %94 {strides = array<i32>} : memref<8x2048xf32, #tpu.memory_space<vmem>>, vector<1x128xf32>,
    %96 = vector.extract_strided_slice %65 {offsets = [15, 0], sizes = [1, 128], strides = [1, 1]} : vector<16x128xf32> to vector<1x128xf32>
    %c0_62 = arith.constant 0 : index
    %c1920 = arith.constant 1920 : index
    %97 = vector.load %arg13[%c0_62, %c1920] : memref<8x2048xf32, #tpu.memory_space<vmem>>, vector<1x128xf32>
    tpu.vector_store %arg13[%c0_62, %c1920], %96 {strides = array<i32>} : memref<8x2048xf32, #tpu.memory_space<vmem>>, vector<1x128xf32>,
    %c0_63 = arith.constant 0 : index
    %c0_64 = arith.constant 0 : index
    %98 = vector.load %arg13[%c0_63, %c0_64] : memref<8x2048xf32, #tpu.memory_space<vmem>>, vector<8x2048xf32>
    %99 = arith.truncf %98 : vector<8x2048xf32> to vector<8x2048xbf16>
    %c0_65 = arith.constant 0 : index
    %c0_66 = arith.constant 0 : index
    %100 = vector.load %arg8[%c0_65, %c0_66] : memref<2048x128xbf16, #tpu.memory_space<vmem>>, vector<2048x128xbf16>
    %cst_67 = arith.constant dense<0.000000e+00> : vector<8x128xf32>
    %101 = tpu.matmul %99, %100, %cst_67 {dimension_numbers = #tpu.dot_dimension_numbers<[1], [0], [0], [1], [0, 0, 1, 1], [], []>} : vector<8x2048xbf16>, vector<2048x128xbf16>, vector<8x128xf32> -> vector<8x128xf32>
    %c0_68 = arith.constant 0 : index
    %c0_69 = arith.constant 0 : index
    %102 = vector.load %arg9[%c0_68, %c0_69] : memref<1x128xf32, #tpu.memory_space<vmem>>, vector<1x128xf32>
    %103 = vector.broadcast %102 : vector<1x128xf32> to vector<8x128xf32>
    %104 = arith.addf %101, %103 : vector<8x128xf32>
    %cst_70 = arith.constant 0.000000e+00 : f32
    %105 = vector.broadcast %cst_70 : f32 to vector<8x128xf32>
    %106 = arith.maximumf %104, %105 : vector<8x128xf32>
    %107 = arith.truncf %106 : vector<8x128xf32> to vector<8x128xbf16>
    %c0_71 = arith.constant 0 : index
    %c0_72 = arith.constant 0 : index
    %108 = vector.load %arg10[%c0_71, %c0_72] : memref<128x128xbf16, #tpu.memory_space<vmem>>, vector<128x128xbf16>
    %cst_73 = arith.constant dense<0.000000e+00> : vector<8x128xf32>
    %109 = tpu.matmul %107, %108, %cst_73 {dimension_numbers = #tpu.dot_dimension_numbers<[1], [0], [0], [1], [0, 0, 1, 1], [], []>} : vector<8x128xbf16>, vector<128x128xbf16>, vector<8x128xf32> -> vector<8x128xf32>
    %c0_74 = arith.constant 0 : index
    %c0_75 = arith.constant 0 : index
    %110 = vector.load %arg11[%c0_74, %c0_75] : memref<1x128xf32, #tpu.memory_space<vmem>>, vector<1x128xf32>
    %111 = vector.broadcast %110 : vector<1x128xf32> to vector<8x128xf32>
    %112 = arith.addf %109, %111 : vector<8x128xf32>
    %113 = vector.extract_strided_slice %112 {offsets = [0, 0], sizes = [1, 128], strides = [1, 1]} : vector<8x128xf32> to vector<1x128xf32>
    %c0_76 = arith.constant 0 : index
    %c0_77 = arith.constant 0 : index
    %c0_78 = arith.constant 0 : index
    %114 = vector.load %arg12[%c0_76, %c0_77, %c0_78] : memref<1x1x128xf32, #tpu.memory_space<vmem>>, vector<1x1x128xf32>
    %115 = vector.shape_cast %114 : vector<1x1x128xf32> to vector<1x128xf32>
    %116 = vector.shape_cast %113 : vector<1x128xf32> to vector<1x1x128xf32>
    tpu.vector_store %arg12[%c0_76, %c0_77, %c0_78], %116 {strides = array<i32>} : memref<1x1x128xf32, #tpu.memory_space<vmem>>, vector<1x1x128xf32>,
    return
  }
  func.func @transform_0(%arg0: i32) -> (i32, i32, i32) {
    %c0_i32 = arith.constant 0 : i32
    %c0_i32_0 = arith.constant 0 : i32
    %c0_i32_1 = arith.constant 0 : i32
    return %arg0, %c0_i32, %c0_i32_0 : i32, i32, i32
  }
  func.func @transform_1(%arg0: i32) -> (i32, i32) {
    %c0_i32 = arith.constant 0 : i32
    %c0_i32_0 = arith.constant 0 : i32
    %c0_i32_1 = arith.constant 0 : i32
    return %c0_i32, %c0_i32_0 : i32, i32
  }
  func.func @transform_2(%arg0: i32) -> (i32, i32) {
    %c0_i32 = arith.constant 0 : i32
    %c0_i32_0 = arith.constant 0 : i32
    %c0_i32_1 = arith.constant 0 : i32
    return %c0_i32, %c0_i32_0 : i32, i32
  }
  func.func @transform_3(%arg0: i32) -> (i32, i32) {
    %c0_i32 = arith.constant 0 : i32
    %c0_i32_0 = arith.constant 0 : i32
    %c0_i32_1 = arith.constant 0 : i32
    return %c0_i32, %c0_i32_0 : i32, i32
  }
  func.func @transform_4(%arg0: i32) -> (i32, i32) {
    %c0_i32 = arith.constant 0 : i32
    %c0_i32_0 = arith.constant 0 : i32
    %c0_i32_1 = arith.constant 0 : i32
    return %c0_i32, %c0_i32_0 : i32, i32
  }
  func.func @transform_5(%arg0: i32) -> (i32, i32) {
    %c0_i32 = arith.constant 0 : i32
    %c0_i32_0 = arith.constant 0 : i32
    %c0_i32_1 = arith.constant 0 : i32
    return %c0_i32, %c0_i32_0 : i32, i32
  }
  func.func @transform_6(%arg0: i32) -> (i32, i32) {
    %c0_i32 = arith.constant 0 : i32
    %c0_i32_0 = arith.constant 0 : i32
    %c0_i32_1 = arith.constant 0 : i32
    return %c0_i32, %c0_i32_0 : i32, i32
  }
  func.func @transform_7(%arg0: i32) -> (i32, i32) {
    %c0_i32 = arith.constant 0 : i32
    %c0_i32_0 = arith.constant 0 : i32
    %c0_i32_1 = arith.constant 0 : i32
    return %c0_i32, %c0_i32_0 : i32, i32
  }
  func.func @transform_8(%arg0: i32) -> (i32, i32) {
    %c0_i32 = arith.constant 0 : i32
    %c0_i32_0 = arith.constant 0 : i32
    %c0_i32_1 = arith.constant 0 : i32
    return %c0_i32, %c0_i32_0 : i32, i32
  }
  func.func @transform_9(%arg0: i32) -> (i32, i32) {
    %c0_i32 = arith.constant 0 : i32
    %c0_i32_0 = arith.constant 0 : i32
    %c0_i32_1 = arith.constant 0 : i32
    return %c0_i32, %c0_i32_0 : i32, i32
  }
  func.func @transform_10(%arg0: i32) -> (i32, i32) {
    %c0_i32 = arith.constant 0 : i32
    %c0_i32_0 = arith.constant 0 : i32
    %c0_i32_1 = arith.constant 0 : i32
    return %c0_i32, %c0_i32_0 : i32, i32
  }
  func.func @transform_11(%arg0: i32) -> (i32, i32, i32) {
    %c0_i32 = arith.constant 0 : i32
    %c0_i32_0 = arith.constant 0 : i32
    %c0_i32_1 = arith.constant 0 : i32
    return %arg0, %c0_i32, %c0_i32_0 : i32, i32, i32
  }
}

</mosaic_0001>

<bundles_post_ra>
// kernel: convnet_forward.1
= control target key start
LH: loop header
LB: loop body
LE: loop exit
PB: predicated region body
PF: predicated region fallthrough
CT: control target
= control target key end

     0   :  { %s7072_s0 = inlined_call_operand.vmem [shape: bf16[2,256,32], index: 0, kind: input, shape index: {}]   ;;  %s7073_s1 = inlined_call_operand.vmem [shape: bf16[32,128], index: 1, kind: input, shape index: {}]   ;;  %s7074_s2 = inlined_call_operand.vmem [shape: f32[1,128], index: 2, kind: input, shape index: {}]   ;;  %s7075_s3 = inlined_call_operand.vmem [shape: bf16[576,256], index: 3, kind: input, shape index: {}]   ;;  %s7076_s4 = inlined_call_operand.hbm [shape: bf16[1152,128], index: 4, kind: input, shape index: {}]   ;;  %s7077_s5 = inlined_call_operand.vmem [shape: f32[1,128], index: 5, kind: input, shape index: {}]   ;;  %s7078_s6 = inlined_call_operand.vmem [shape: bf16[16,64], index: 6, kind: input, shape index: {}]   ;;  %s7079_s7 = inlined_call_operand.vmem [shape: bf16[2048,128], index: 7, kind: input, shape index: {}]   ;;  %s7080_s8 = inlined_call_operand.vmem [shape: f32[1,128], index: 8, kind: input, shape index: {}]   ;;  %s7081_s9 = inlined_call_operand.vmem [shape: bf16[128,128], index: 9, kind: input, shape index: {}]   ;;  %s7082_s10 = inlined_call_operand.vmem [shape: f32[1,128], index: 10, kind: input, shape index: {}]   ;;  %s7083_s11 = inlined_call_operand.hbm [shape: f32[2,1,128], index: 11, kind: output, shape index: {}]  }
   0x1   :  { %7084 = sst [smem:[#allocation9_spill]] %s7072_s0 }
   0x2   :  { %7085 = sst [smem:[#allocation10_spill]] %s7073_s1 }
   0x3   :  { %16 = vsyncpa [#allocation4], 0 }
   0x4   :  { %17 = vsyncpa [#allocation5], 0 }
   0x5   :  { %19 = vsyncpa [#allocation5 + $0x1], 0  ;;  %s5744_s17 = smov 0   ;;  %s5746_s18 = smov 0  }
   0x6   :  { %s5748_s19 = smov 0   ;;  %s5750_s20 = smov 0  }
   0x7 LB: > { %s5765_s21 = sadd.s32 4294967295, %s5678_s20   ;;  %s4002_s22 = sadd.s32 4294967294, %s5678_s20   ;;  %s5678_s20 = sphi %s5750_s20, %s7093_s20   ;;  %s5674_s19 = sphi %s5748_s19, %s7092_s19   ;;  %s5670_s18 = sphi %s5746_s18, %s7091_s18   ;;  %s5666_s17 = sphi %s5744_s17, %s7090_s17  }
   0x8   : > { %s5769_s23 = sadd.s32 1, %s5678_s20   ;;  %s268_s24 = sadd.s32 1, %s5674_s19 }
   0x9   : > { %s265_s25 = ssub.s32 %s5678_s20, %s5769_s23  ;;  %p278_p0 = scmp.ne.s32.totalorder %s5674_s19, %s5670_s18 }
   0xa   : > { %p266_p1 = scmp.eq.s32.totalorder %s265_s25, 0  ;;  %p279_p2 = scmp.eq.s32.totalorder %s5765_s21, 1 }
   0xb   : > { %p284_p3 = scmp.ne.s32.totalorder %s5670_s18, %s5666_s17  ;;  %p285_p4 = scmp.eq.s32.totalorder %s4002_s22, 1 }
   0xc   : > { %s5780_s26 = scalar_select %p266_p1, %s5674_s19, %s268_s24  }
   0xd   : > { %p5782_p5 = por %p279_p2, %p278_p0  ;;  %p5786_p6 = por %p285_p4, %p284_p3 }
   0xe   : > { %p4003_p7 = scmp.ge.s32.totalorder %s5678_s20, 1  ;;  %p292_p8 = scmp.lt.s32.totalorder %s5678_s20, 3 }
   0xf   : > { %p5539_p9 = scmp.eq.s32.totalorder %s5765_s21, 0  ;;  %s312_s12 = sshll.u32 %s7076_s4, 4  ;;  %s313_s12 = int_to_ptr.hbm [resolvable:$true] %s312_s12 }
  0x10   : > { %p293_p10 = pnand %p4003_p7, %p292_p8  ;;  %s5680_s13 = smov [#allocation3]  }
  0x11   : > { %s314_s14 = sshll.u32 %s5680_s13, 4  ;;  %s5681_s15 = smov 64   ;;  %s315_s14 = int_to_ptr.vmem [resolvable:$true] %s314_s14 }
  0x12   : > { %p5531_p11 = pneg %p293_p10  ;;  %s5682_s16 = smov 4  }
  0x13   : > { %356 = sbr.rel (%p293_p10) target bundleno = 1866 (0x74a), region = 64 }
  0x14   : > { %p5532_p12 = pnand %p5539_p9, %p5531_p11 }
  0x16   : > { %5534 = dma.hbm_to_vmem [thread:$0]  (!%p5532_p12), %s313_s12, 9216, %s315_s14, [#allocation4], %s5681_s15, %s5681_s15, %s5682_s16  }
  0x18   : > { %5657 = dma.done.wait (%p5539_p9), [#allocation4], 9216  }
  0x19   : > { %5659 = vsyncadd (%p5539_p9), [#allocation4], 4294958080  ;;  %p396_p13 = scmp.lt.s32.totalorder %s5765_s21, 1  ;;  %s7088_s1 = sld [smem:[#allocation10_spill]]  ;;  %vm550_vm0 = vcmask 261120   ;;  %vm2506_vm1 = vcmask 523264  }
  0x1a   : > { %s7089_s0 = sld [smem:[#allocation9_spill]]  ;;  %v5835_v12 = vld [vmem:[%s7074_s2] ss:$0 sm:$0xff]  ;;  %s3931_s25 = scalar_lea.hbm %s7083_s11, %s5765_s21 }
  0x1b   : > { %s397_s22 = scalar_select %p396_p13, %s5765_s21, 1 }
  0x1c   : > { %s3935_s14 = sshll.u32 %s3931_s25, 4  ;;  %s3936_s14 = int_to_ptr.hbm [resolvable:$true] %s3935_s14 }
  0x1d   : > { %s5225_s24 = sshll.u32 %s397_s22, 7  ;;  %s394_s22 = sand.u32 1, %s5670_s18  }
  0x1e   : > { %s395_s13 = scalar_lea.vmem [#allocation6], %s394_s22  ;;  %s5626_s16 = sshra.s32 %s3936_s14, 4  ;;  %s5627_s16 = int_to_ptr.hbm [resolvable:$true] %s5626_s16 }
  0x1f   : > { %v5243_v0 = vld [vmem:[%s7088_s1 + $0x8] sm:$0xff]  ;;  %v5242_v1 = vld [vmem:[%s7088_s1] sm:$0xff]  ;;  %s3933_s12 = sshll.u32 %s395_s13, 4  ;;  %s5628_s1 = scalar_lea.hbm %s5627_s16, 1  ;;  %s3934_s12 = int_to_ptr.vmem [resolvable:$true] %s3933_s12 }
  0x20   : > { %605 = vmatpush.bf16.msra.mxu0 %v5243_v0  ;;  %s5813_s15 = scalar_lea.vmem %s7089_s0, %s5225_s24  ;;  %p5629_p0 = scmp.ne.s32.totalorder %s5627_s16, %s5628_s1 }
  0x21   : > { %v5226_v2 = vld [vmem:[%s5813_s15] sm:$0xff]  ;;  %v5227_v3 = vld [vmem:[%s5813_s15 + $0x8] sm:$0xff]  ;;  %v5228_v4 = vld [vmem:[%s5813_s15 + $0x10] sm:$0xff]  ;;  %s5632_s0 = scalar_lea.hbm %s7083_s11, 2  ;;  %p5633_p3 = scmp.lt.s32.totalorder %s5627_s16, %s7083_s11 }
  0x22   : > { %v5229_v5 = vld [vmem:[%s5813_s15 + $0x18] sm:$0xff]  ;;  %v5230_v6 = vld [vmem:[%s5813_s15 + $0x20] sm:$0xff]  ;;  %v5231_v7 = vld [vmem:[%s5813_s15 + $0x28] sm:$0xff]  ;;  %p5630_p1 = pnand %p5629_p0, %p5782_p5  ;;  %p5634_p4 = scmp.lt.s32.totalorder %s5632_s0, %s5628_s1 }
  0x23   : > { %v5232_v8 = vld [vmem:[%s5813_s15 + $0x30] sm:$0xff]  ;;  %v5233_v9 = vld [vmem:[%s5813_s15 + $0x38] sm:$0xff]  ;;  %v5234_v10 = vld [vmem:[%s5813_s15 + $0x40] sm:$0xff] }
  0x24   : > { %606 = vmatpush.bf16.msra.mxu0 %v5242_v1  ;;  %v5235_v19 = vld [vmem:[%s5813_s15 + $0x48] sm:$0xff]  ;;  %v5236_v27 = vld [vmem:[%s5813_s15 + $0x50] sm:$0xff]  ;;  %v5237_v35 = vld [vmem:[%s5813_s15 + $0x58] sm:$0xff]  ;;  %p5631_p2 = pneg %p5630_p1  ;;  %p5635_p7 = por %p5634_p4, %p5633_p3 }
  0x25   : > { %v5238_v43 = vld [vmem:[%s5813_s15 + $0x60] sm:$0xff]  ;;  %v5239_v46 = vld [vmem:[%s5813_s15 + $0x68] sm:$0xff]  ;;  %v5240_v49 = vld [vmem:[%s5813_s15 + $0x70] sm:$0xff] }
  0x26   : > { %v5241_v52 = vld [vmem:[%s5813_s15 + $0x78] sm:$0xff]  ;;  %s3923_s15 = scalar_lea.sflag [#allocation5], %s394_s22  ;;  %p5636_p8 = pnand %p5635_p7, %p5631_p2 }
  0x27   : > { %4082 = vmatmul.msk.bf16.vlgmr.msra.gmra.mxu0 %vm550_vm0, %v5226_v2 }
  0x37   : > { %4083 = vmatmul.msk.bf16.gmra.mxu0 %vm550_vm0, %v5227_v3 }
  0x47   : > { %4084 = vmatmul.msk.bf16.gmra.mxu0 %vm550_vm0, %v5228_v4 }
  0x57   : > { %4085 = vmatmul.msk.bf16.gmra.mxu0 %vm550_vm0, %v5229_v5 }
  0x67   : > { %4086 = vmatmul.msk.bf16.gmra.mxu0 %vm550_vm0, %v5230_v6 }
  0x77   : > { %4087 = vmatmul.msk.bf16.gmra.mxu0 %vm550_vm0, %v5231_v7 }
  0x87   : > { %4088 = vmatmul.msk.bf16.gmra.mxu0 %vm550_vm0, %v5232_v8 }
  0x97   : > { %4089 = vmatmul.msk.bf16.gmra.mxu0 %vm550_vm0, %v5233_v9 }
  0xa4   : > { %v608_v11 = vpop.f32.mrf.mxu0 }
  0xa5   : > { %v609_v13 = vadd.f32 %v5835_v12, %v608_v11 }
  0xa7   : > { %4090 = vmatmul.msk.bf16.gmra.mxu0 %vm550_vm0, %v5234_v10  ;;  %v688_v16 = vmax.f32 %v609_v13, 0.0 }
  0xac   : > { %v610_v14 = vpop.f32.mrf.mxu0 }
  0xad   : > { %v611_v15 = vadd.f32 %v5835_v12, %v610_v14 }
  0xaf   : > { %v689_v17 = vmax.f32 %v611_v15, 0.0 }
  0xb1   : > { %v5840_v18 = vpack.c.bf16 %v689_v17, %v688_v16 }
  0xb4   : > { %v613_v20 = vpop.f32.mrf.mxu0 }
  0xb5   : > { %v614_v21 = vadd.f32 %v5835_v12, %v613_v20 }
  0xb7   : > { %4091 = vmatmul.msk.bf16.gmra.mxu0 %vm550_vm0, %v5235_v19  ;;  %v690_v24 = vmax.f32 %v614_v21, 0.0 }
  0xbc   : > { %v615_v22 = vpop.f32.mrf.mxu0 }
  0xbd   : > { %v616_v23 = vadd.f32 %v5835_v12, %v615_v22 }
  0xbf   : > { %v691_v25 = vmax.f32 %v616_v23, 0.0 }
  0xc1   : > { %v5846_v26 = vpack.c.bf16 %v691_v25, %v690_v24 }
  0xc4   : > { %v618_v28 = vpop.f32.mrf.mxu0 }
  0xc5   : > { %v619_v29 = vadd.f32 %v5835_v12, %v618_v28 }
  0xc7   : > { %4092 = vmatmul.msk.bf16.gmra.mxu0 %vm550_vm0, %v5236_v27  ;;  %v692_v32 = vmax.f32 %v619_v29, 0.0 }
  0xcc   : > { %v620_v30 = vpop.f32.mrf.mxu0 }
  0xcd   : > { %v621_v31 = vadd.f32 %v5835_v12, %v620_v30 }
  0xcf   : > { %v693_v33 = vmax.f32 %v621_v31, 0.0 }
  0xd1   : > { %v722_v34 = vpack.c.bf16 %v693_v33, %v692_v32  ;;  %v5245_v32 = vld [vmem:[%s7075_s3 + $0x4] sm:$0xf0] }
  0xd4   : > { %v623_v36 = vpop.f32.mrf.mxu0 }
  0xd5   : > { %v624_v37 = vadd.f32 %v5835_v12, %v623_v36 }
  0xd7   : > { %4093 = vmatmul.msk.bf16.gmra.mxu0 %vm550_vm0, %v5237_v35  ;;  %v694_v40 = vmax.f32 %v624_v37, 0.0 }
  0xdc   : > { %v625_v38 = vpop.f32.mrf.mxu0 }
  0xdd   : > { %v626_v39 = vadd.f32 %v5835_v12, %v625_v38 }
  0xdf   : > { %v695_v41 = vmax.f32 %v626_v39, 0.0 }
  0xe1   : > { %v723_v42 = vpack.c.bf16 %v695_v41, %v694_v40 }
  0xe4   : > { %v628_v44 = vpop.f32.mrf.mxu0 }
  0xe5   : > { %v629_v6 = vadd.f32 %v5835_v12, %v628_v44 }
  0xe7   : > { %4094 = vmatmul.msk.bf16.gmra.mxu0 %vm550_vm0, %v5238_v43  ;;  %v696_v10 = vmax.f32 %v629_v6, 0.0 }
  0xec   : > { %v630_v45 = vpop.f32.mrf.mxu0 }
  0xed   : > { %v631_v3 = vadd.f32 %v5835_v12, %v630_v45 }
  0xef   : > { %v697_v8 = vmax.f32 %v631_v3, 0.0 }
  0xf1   : > { %v724_v13 = vpack.c.bf16 %v697_v8, %v696_v10  ;;  %v5249_v10 = vld [vmem:[%s7075_s3 + $0x24] sm:$0xf0] }
  0xf4   : > { %v633_v47 = vpop.f32.mrf.mxu0 }
  0xf5   : > { %v634_v0 = vadd.f32 %v5835_v12, %v633_v47 }
  0xf7   : > { %4095 = vmatmul.msk.bf16.gmra.mxu0 %vm550_vm0, %v5239_v46  ;;  %v698_v7 = vmax.f32 %v634_v0, 0.0 }
  0xfc   : > { %v635_v48 = vpop.f32.mrf.mxu0 }
  0xfd   : > { %v636_v61 = vadd.f32 %v5835_v12, %v635_v48 }
  0xff   : > { %v699_v4 = vmax.f32 %v636_v61, 0.0 }
 0x101   : > { %v725_v9 = vpack.c.bf16 %v699_v4, %v698_v7 }
 0x104   : > { %v638_v50 = vpop.f32.mrf.mxu0 }
 0x105   : > { %v639_v58 = vadd.f32 %v5835_v12, %v638_v50  ;;  %v4108_v50 = vld [vmem:[%s7075_s3 + $0x10] sm:$0xf] }
 0x107   : > { %4096 = vmatmul.msk.bf16.gmra.mxu0 %vm550_vm0, %v5240_v49  ;;  %v700_v1 = vmax.f32 %v639_v58, 0.0 }
 0x10c   : > { %v640_v51 = vpop.f32.mrf.mxu0 }
 0x10d   : > { %v641_v56 = vadd.f32 %v5835_v12, %v640_v51  ;;  %v5247_v51 = vld [vmem:[%s7075_s3 + $0x14] sm:$0xf0] }
 0x10f   : > { %v701_v62 = vmax.f32 %v641_v56, 0.0 }
 0x111   : > { %v726_v5 = vpack.c.bf16 %v701_v62, %v700_v1 }
 0x114   : > { %v643_v53 = vpop.f32.mrf.mxu0 }
 0x115   : > { %v644_v54 = vadd.f32 %v5835_v12, %v643_v53 }
 0x117   : > { %4097 = vmatmul.msk.bf16.gmra.mxu0 %vm550_vm0, %v5241_v52  ;;  %v702_v59 = vmax.f32 %v644_v54, 0.0  ;;  %v4109_v54 = vor.u32 %v5247_v51, %v4108_v50 }
 0x11c   : > { %v645_v55 = vpop.f32.mrf.mxu0 }
 0x11d   : > { %v646_v57 = vadd.f32 %v5835_v12, %v645_v55 }
 0x11f   : > { %v703_v60 = vmax.f32 %v646_v57, 0.0 }
 0x121   : > { %v727_v63 = vpack.c.bf16 %v703_v60, %v702_v59 }
 0x123   : > { %1168 = vmatpush.bf16.msra.mxu1 %v727_v63 }
 0x124   : > { %v5870_v2 = vpop.f32.mrf.mxu0 }
 0x127   : > { %1169 = vmatpush.bf16.msra.mxu1 %v726_v5  ;;  %v649_v5 = vadd.f32 %v5835_v12, %v5870_v2 }
 0x12b   : > { %1170 = vmatpush.bf16.msra.mxu1 %v725_v9  ;;  %v4116_v9 = vld [vmem:[%s7075_s3 + $0x20] sm:$0xf] }
 0x12c   : > { %v5874_v11 = vpop.f32.mrf.mxu0  ;;  %v4117_v2 = vor.u32 %v5249_v10, %v4116_v9  ;;  %v5262_v9 = vld [vmem:[%s7075_s3 + $0x94] sm:$0xf]  ;;  %v4174_v10 = vld [vmem:[%s7075_s3 + $0x98] sm:$0xf0] }
 0x12d   : > { %v651_v1 = vadd.f32 %v5835_v12, %v5874_v11  ;;  %v5244_v11 = vld [vmem:[%s7075_s3 + $0x4] sm:$0xf] }
 0x12f   : > { %1171 = vmatpush.bf16.msra.mxu1 %v724_v13  ;;  %v705_v7 = vmax.f32 %v651_v1, 0.0  ;;  %v704_v13 = vmax.f32 %v649_v5, 0.0  ;;  %v4180_v1 = vld [vmem:[%s7075_s3 + $0xa0] sm:$0xf] }
 0x133   : > { %1172 = vmatpush.bf16.msra.mxu1 %v723_v42 }
 0x134   : > { %v653_v14 = vpop.f32.mrf.mxu0 }
 0x135   : > { %v654_v63 = vadd.f32 %v5835_v12, %v653_v14  ;;  %v728_v14 = vpack.c.bf16 %v705_v7, %v704_v13 }
 0x137   : > { %1173 = vmatpush.bf16.msra.mxu1 %v722_v34  ;;  %v706_v6 = vmax.f32 %v654_v63, 0.0  ;;  %v4166_v63 = vld [vmem:[%s7075_s3 + $0x88] sm:$0xf0] }
 0x13b   : > { %1174 = vmatpush.bf16.msra.mxu1 %v5846_v26 }
 0x13c   : > { %v655_v15 = vpop.f32.mrf.mxu0 }
 0x13d   : > { %v656_v60 = vadd.f32 %v5835_v12, %v655_v15 }
 0x13f   : > { %1175 = vmatpush.bf16.msra.mxu1 %v5840_v18  ;;  %v4100_v18 = vld [vmem:[%s7075_s3] sm:$0xf]  ;;  %v707_v3 = vmax.f32 %v656_v60, 0.0 }
 0x140   : > { %v4101_v33 = vor.u32 %v5245_v32, %v4100_v18  ;;  %v4126_v18 = vld [vmem:[%s7075_s3 + $0x38] sm:$0xf0] }
 0x141   : > { %v729_v8 = vpack.c.bf16 %v707_v3, %v706_v6  ;;  %v5265_v3 = vld [vmem:[%s7075_s3 + $0xa4] sm:$0xf0] }
 0x142   : > { %1176 = vmatmul.bf16.vlgmr.msra.gmra.mxu1 %v4101_v33  ;;  %v4181_v5 = vor.u32 %v5265_v3, %v4180_v1 }
 0x144   : > { %v658_v16 = vpop.f32.mrf.mxu0 }
 0x145   : > { %v659_v58 = vadd.f32 %v5835_v12, %v658_v16  ;;  %v4124_v16 = vld [vmem:[%s7075_s3 + $0x30] sm:$0xf] }
 0x147   : > { %v708_v0 = vmax.f32 %v659_v58, 0.0  ;;  %v5263_v58 = vld [vmem:[%s7075_s3 + $0x94] sm:$0xf0] }
 0x14c   : > { %v660_v17 = vpop.f32.mrf.mxu0 }
 0x14d   : > { %v661_v55 = vadd.f32 %v5835_v12, %v660_v17  ;;  %v5251_v17 = vld [vmem:[%s7075_s3 + $0x34] sm:$0xf0] }
 0x14f   : > { %v709_v61 = vmax.f32 %v661_v55, 0.0  ;;  %v4158_v55 = vld [vmem:[%s7075_s3 + $0x78] sm:$0xf0] }
 0x151   : > { %v730_v4 = vpack.c.bf16 %v709_v61, %v708_v0 }
 0x152   : > { %1181 = vmatmul.bf16.gmra.mxu1 %v4109_v54  ;;  %v5258_v54 = vld [vmem:[%s7075_s3 + $0x74] sm:$0xf] }
 0x154   : > { %v663_v19 = vpop.f32.mrf.mxu0 }
 0x155   : > { %v664_v52 = vadd.f32 %v5835_v12, %v663_v19  ;;  %v5246_v19 = vld [vmem:[%s7075_s3 + $0x14] sm:$0xf] }
 0x157   : > { %v710_v59 = vmax.f32 %v664_v52, 0.0 }
 0x15c   : > { %v665_v20 = vpop.f32.mrf.mxu0 }
 0x15d   : > { %v666_v47 = vadd.f32 %v5835_v12, %v665_v20  ;;  %v4110_v20 = vld [vmem:[%s7075_s3 + $0x18] sm:$0xf0] }
 0x15f   : > { %v711_v56 = vmax.f32 %v666_v47, 0.0  ;;  %v5261_v47 = vld [vmem:[%s7075_s3 + $0x84] sm:$0xf0] }
 0x161   : > { %v731_v62 = vpack.c.bf16 %v711_v56, %v710_v59  ;;  %v4161_v59 = vor.u32 %v5258_v54, %v4158_v55  ;;  %v5268_v55 = vld [vmem:[%s7075_s3 + $0xc4] sm:$0xf] }
 0x162   : > { %1186 = vmatmul.bf16.gmra.mxu1 %v4117_v2  ;;  %v5267_v2 = vld [vmem:[%s7075_s3 + $0xb4] sm:$0xf0] }
 0x164   : > { %v668_v21 = vpop.f32.mrf.mxu0 }
 0x165   : > { %v669_v45 = vadd.f32 %v5835_v12, %v668_v21  ;;  %v4125_v21 = vor.u32 %v5251_v17, %v4124_v16 }
 0x167   : > { %v712_v53 = vmax.f32 %v669_v45, 0.0 }
 0x16c   : > { %v670_v22 = vpop.f32.mrf.mxu0 }
 0x16d   : > { %v671_v42 = vadd.f32 %v5835_v12, %v670_v22  ;;  %v4113_v22 = vor.u32 %v5246_v19, %v4110_v20  ;;  %v5331_v19 = vld [vmem:[#allocation3 + $0x78] sm:$0xff] }
 0x16e   : > { %1634 = vmatpush.bf16.msra.mxu3 %v5331_v19 }
 0x16f   : > { %v713_v48 = vmax.f32 %v671_v42, 0.0  ;;  %v5254_v42 = vld [vmem:[%s7075_s3 + $0x54] sm:$0xf] }
 0x171   : > { %v732_v57 = vpack.c.bf16 %v713_v48, %v712_v53  ;;  %v5256_v48 = vld [vmem:[%s7075_s3 + $0x64] sm:$0xf] }
 0x172   : > { %1191 = vmatmul.bf16.gmra.mxu1 %v4125_v21 }
 0x174   : > { %v673_v23 = vpop.f32.mrf.mxu0 }
 0x175   : > { %v674_v40 = vadd.f32 %v5835_v12, %v673_v23  ;;  %v4132_v23 = vld [vmem:[%s7075_s3 + $0x40] sm:$0xf] }
 0x177   : > { %v714_v46 = vmax.f32 %v674_v40, 0.0  ;;  %v4156_v40 = vld [vmem:[%s7075_s3 + $0x70] sm:$0xf] }
 0x17c   : > { %v675_v24 = vpop.f32.mrf.mxu0 }
 0x17d   : > { %v676_v37 = vadd.f32 %v5835_v12, %v675_v24  ;;  %v5253_v24 = vld [vmem:[%s7075_s3 + $0x44] sm:$0xf0] }
 0x17f   : > { %v715_v43 = vmax.f32 %v676_v37, 0.0  ;;  %v4134_v37 = vld [vmem:[%s7075_s3 + $0x48] sm:$0xf0] }
 0x181   : > { %v733_v49 = vpack.c.bf16 %v715_v43, %v714_v46  ;;  %v4142_v43 = vld [vmem:[%s7075_s3 + $0x58] sm:$0xf0]  ;;  %v4164_v46 = vld [vmem:[%s7075_s3 + $0x80] sm:$0xf] }
 0x182   : > { %v4145_v45 = vor.u32 %v5254_v42, %v4142_v43  ;;  %v4165_v50 = vor.u32 %v5261_v47, %v4164_v46  ;;  %v4190_v42 = vld [vmem:[%s7075_s3 + $0xb8] sm:$0xf0]  ;;  %v4204_v46 = vld [vmem:[%s7075_s3 + $0xd0] sm:$0xf]  ;;  %v5271_v47 = vld [vmem:[%s7075_s3 + $0xd4] sm:$0xf0] }
 0x184   : > { %v678_v25 = vpop.f32.mrf.mxu0 }
 0x185   : > { %v679_v34 = vadd.f32 %v5835_v12, %v678_v25  ;;  %v5248_v25 = vld [vmem:[%s7075_s3 + $0x24] sm:$0xf] }
 0x187   : > { %v716_v41 = vmax.f32 %v679_v34, 0.0  ;;  %v4148_v34 = vld [vmem:[%s7075_s3 + $0x60] sm:$0xf] }
 0x18c   : > { %v680_v27 = vpop.f32.mrf.mxu0 }
 0x18d   : > { %v681_v31 = vadd.f32 %v5835_v12, %v680_v27  ;;  %v4118_v27 = vld [vmem:[%s7075_s3 + $0x28] sm:$0xf0] }
 0x18f   : > { %v717_v38 = vmax.f32 %v681_v31, 0.0  ;;  %v5255_v31 = vld [vmem:[%s7075_s3 + $0x54] sm:$0xf0] }
 0x191   : > { %v734_v44 = vpack.c.bf16 %v717_v38, %v716_v41  ;;  %v5259_v41 = vld [vmem:[%s7075_s3 + $0x74] sm:$0xf0] }
 0x194   : > { %v683_v28 = vpop.f32.mrf.mxu0 }
 0x195   : > { %v684_v29 = vadd.f32 %v5835_v12, %v683_v28  ;;  %v4133_v28 = vor.u32 %v5253_v24, %v4132_v23  ;;  %v5329_v24 = vld [vmem:[#allocation3 + $0x68] sm:$0xff] }
 0x197   : > { %v718_v35 = vmax.f32 %v684_v29, 0.0  ;;  %v4121_v29 = vor.u32 %v5248_v25, %v4118_v27  ;;  %1196 = vmatmul.bf16.gmra.mxu1 %v4133_v28  ;;  %v5264_v25 = vld [vmem:[%s7075_s3 + $0xa4] sm:$0xf]  ;;  %v4182_v27 = vld [vmem:[%s7075_s3 + $0xa8] sm:$0xf0] }
 0x19c   : > { %v685_v30 = vpop.f32.mrf.mxu0 }
 0x19d   : > { %v686_v26 = vadd.f32 %v5835_v12, %v685_v30  ;;  %v4102_v12 = vld [vmem:[%s7075_s3 + $0x8] sm:$0xf0]  ;;  %v4140_v30 = vld [vmem:[%s7075_s3 + $0x50] sm:$0xf] }
 0x19e   : > { %v4105_v15 = vor.u32 %v5244_v11, %v4102_v12  ;;  %v4141_v32 = vor.u32 %v5255_v31, %v4140_v30  ;;  %v4188_v12 = vld [vmem:[%s7075_s3 + $0xb0] sm:$0xf]  ;;  %v5328_v30 = vld [vmem:[#allocation3 + $0x60] sm:$0xff] }
 0x19f   : > { %v719_v36 = vmax.f32 %v686_v26, 0.0  ;;  %v5250_v26 = vld [vmem:[%s7075_s3 + $0x34] sm:$0xf]  ;;  %v4189_v16 = vor.u32 %v5267_v2, %v4188_v12  ;;  %v4196_v31 = vld [vmem:[%s7075_s3 + $0xc0] sm:$0xf] }
 0x1a0   : > { %v4129_v33 = vor.u32 %v5250_v26, %v4126_v18  ;;  %v5269_v26 = vld [vmem:[%s7075_s3 + $0xc4] sm:$0xf0] }
 0x1a1   : > { %v735_v39 = vpack.c.bf16 %v719_v36, %v718_v35  ;;  %v5257_v35 = vld [vmem:[%s7075_s3 + $0x64] sm:$0xf0]  ;;  %v5252_v36 = vld [vmem:[%s7075_s3 + $0x44] sm:$0xf] }
 0x1a2   : > { %v4149_v38 = vor.u32 %v5257_v35, %v4148_v34  ;;  %v5327_v35 = vld [vmem:[#allocation3 + $0x58] sm:$0xff] }
 0x1a3   : > { %1357 = vmatpush.bf16.msra.mxu2 %v735_v39  ;;  %v4137_v39 = vor.u32 %v5252_v36, %v4134_v37 }
 0x1a7   : > { %1358 = vmatpush.bf16.msra.mxu2 %v734_v44  ;;  %1201 = vmatmul.bf16.gmra.mxu1 %v4141_v32  ;;  %v4157_v44 = vor.u32 %v5259_v41, %v4156_v40  ;;  %v4185_v32 = vor.u32 %v5264_v25, %v4182_v27  ;;  %v5325_v40 = vld [vmem:[#allocation3 + $0x48] sm:$0xff]  ;;  %v5266_v41 = vld [vmem:[%s7075_s3 + $0xb4] sm:$0xf] }
 0x1a8   : > { %v4214_v25 = vld [vmem:[%s7075_s3 + $0xe8] sm:$0xf0] }
 0x1ab   : > { %1359 = vmatpush.bf16.msra.mxu2 %v733_v49  ;;  %v4150_v49 = vld [vmem:[%s7075_s3 + $0x68] sm:$0xf0] }
 0x1ac   : > { %v4153_v52 = vor.u32 %v5256_v48, %v4150_v49  ;;  %v4193_v49 = vor.u32 %v5266_v41, %v4190_v42  ;;  %v5318_v41 = vld [vmem:[#allocation3 + $0x10] sm:$0xff]  ;;  %v5317_v42 = vld [vmem:[#allocation3 + $0x8] sm:$0xff] }
 0x1af   : > { %1360 = vmatpush.bf16.msra.mxu2 %v732_v57  ;;  %v4172_v57 = vld [vmem:[%s7075_s3 + $0x90] sm:$0xf] }
 0x1b0   : > { %v4173_v60 = vor.u32 %v5263_v58, %v4172_v57 }
 0x1b3   : > { %1361 = vmatpush.bf16.msra.mxu2 %v731_v62  ;;  %v5260_v62 = vld [vmem:[%s7075_s3 + $0x84] sm:$0xf] }
 0x1b7   : > { %1362 = vmatpush.bf16.msra.mxu2 %v730_v4  ;;  %1206 = vmatmul.bf16.gmra.mxu1 %v4149_v38  ;;  %v4169_v4 = vor.u32 %v5260_v62, %v4166_v63  ;;  %v5326_v38 = vld [vmem:[#allocation3 + $0x50] sm:$0xff] }
 0x1bb   : > { %1363 = vmatpush.bf16.msra.mxu2 %v729_v8 }
 0x1bf   : > { %1364 = vmatpush.bf16.msra.mxu2 %v728_v14  ;;  %v1177_v51 = vpop.f32.mrf.mxu1 }
 0x1c2   : > { %1365 = vmatmul.bf16.vlgmr.msra.gmra.mxu2 %v4105_v15  ;;  %v4177_v15 = vor.u32 %v5262_v9, %v4174_v10  ;;  %v4220_v9 = vld [vmem:[%s7075_s3 + $0xf0] sm:$0xf]  ;;  %v5275_v10 = vld [vmem:[%s7075_s3 + $0xf4] sm:$0xf0] }
 0x1c3   : > { %v4221_v2 = vor.u32 %v5275_v10, %v4220_v9 }
 0x1c7   : > { %1211 = vmatmul.bf16.gmra.mxu1 %v4157_v44  ;;  %v1179_v53 = vpop.f32.mrf.mxu1 }
 0x1cf   : > { %v1182_v56 = vpop.f32.mrf.mxu1 }
 0x1d2   : > { %1370 = vmatmul.bf16.gmra.mxu2 %v4113_v22  ;;  %v5330_v22 = vld [vmem:[#allocation3 + $0x70] sm:$0xff] }
 0x1d3   : > { %1635 = vmatpush.bf16.msra.mxu3 %v5330_v22  ;;  %v5321_v22 = vld [vmem:[#allocation3 + $0x28] sm:$0xff] }
 0x1d7   : > { %1216 = vmatmul.bf16.gmra.mxu1 %v4165_v50  ;;  %v1184_v61 = vpop.f32.mrf.mxu1  ;;  %1636 = vmatpush.bf16.msra.mxu3 %v5329_v24  ;;  %v4205_v50 = vor.u32 %v5271_v47, %v4204_v46  ;;  %v5272_v24 = vld [vmem:[%s7075_s3 + $0xe4] sm:$0xf] }
 0x1d8   : > { %v5316_v47 = vld [vmem:[#allocation3] sm:$0xff] }
 0x1db   : > { %1637 = vmatpush.bf16.msra.mxu3 %v5328_v30  ;;  %v4228_v30 = vld [vmem:[%s7075_s3 + $0x100] sm:$0xf] }
 0x1df   : > { %v1187_v0 = vpop.f32.mrf.mxu1  ;;  %1638 = vmatpush.bf16.msra.mxu3 %v5327_v35 }
 0x1e2   : > { %1375 = vmatmul.bf16.gmra.mxu2 %v4121_v29 }
 0x1e3   : > { %1639 = vmatpush.bf16.msra.mxu3 %v5326_v38 }
 0x1e7   : > { %1221 = vmatmul.bf16.gmra.mxu1 %v4173_v60  ;;  %v1189_v7 = vpop.f32.mrf.mxu1  ;;  %1640 = vmatpush.bf16.msra.mxu3 %v5325_v40  ;;  %v5273_v60 = vld [vmem:[%s7075_s3 + $0xe4] sm:$0xf0] }
 0x1ef   : > { %v1192_v11 = vpop.f32.mrf.mxu1 }
 0x1f2   : > { %1380 = vmatmul.bf16.gmra.mxu2 %v4129_v33  ;;  %v4197_v33 = vor.u32 %v5269_v26, %v4196_v31  ;;  %v5277_v31 = vld [vmem:[%s7075_s3 + $0x104] sm:$0xf0] }
 0x1f3   : > { %v4229_v35 = vor.u32 %v5277_v31, %v4228_v30  ;;  %v5338_v31 = vld [vmem:[#allocation3 + $0xb0] sm:$0xff] }
 0x1f7   : > { %1226 = vmatmul.bf16.gmra.mxu1 %v4181_v5  ;;  %v1194_v21 = vpop.f32.mrf.mxu1  ;;  %v4206_v5 = vld [vmem:[%s7075_s3 + $0xd8] sm:$0xf0] }
 0x202   : > { %1385 = vmatmul.bf16.gmra.mxu2 %v4137_v39 }
 0x207   : > { %1231 = vmatmul.bf16.gmra.mxu1 %v4189_v16  ;;  %v5323_v16 = vld [vmem:[#allocation3 + $0x38] sm:$0xff] }
 0x212   : > { %1390 = vmatmul.bf16.gmra.mxu2 %v4145_v45  ;;  %v5324_v45 = vld [vmem:[#allocation3 + $0x40] sm:$0xff] }
 0x213   : > { %1641 = vmatpush.bf16.msra.mxu3 %v5324_v45 }
 0x214   : > { %v1197_v29 = vpop.f32.mrf.mxu1 }
 0x217   : > { %1236 = vmatmul.bf16.gmra.mxu1 %v4197_v33  ;;  %1711 = vmatpush.bf16.msrb.mxu3 %v5323_v16  ;;  %v4217_v33 = vor.u32 %v5272_v24, %v4214_v25  ;;  %v4238_v16 = vld [vmem:[%s7075_s3 + $0x118] sm:$0xf0] }
 0x21c   : > { %v1199_v37 = vpop.f32.mrf.mxu1 }
 0x222   : > { %1395 = vmatmul.bf16.gmra.mxu2 %v4153_v52 }
 0x224   : > { %v1202_v44 = vpop.f32.mrf.mxu1 }
 0x227   : > { %1241 = vmatmul.bf16.gmra.mxu1 %v4205_v50  ;;  %v5279_v50 = vld [vmem:[%s7075_s3 + $0x114] sm:$0xf0] }
 0x232   : > { %1400 = vmatmul.bf16.gmra.mxu2 %v4161_v59  ;;  %v4212_v59 = vld [vmem:[%s7075_s3 + $0xe0] sm:$0xf] }
 0x233   : > { %v4213_v63 = vor.u32 %v5273_v60, %v4212_v59 }
 0x237   : > { %1246 = vmatmul.bf16.gmra.mxu1 %v4213_v63  ;;  %v4230_v63 = vld [vmem:[%s7075_s3 + $0x108] sm:$0xf0] }
 0x242   : > { %1405 = vmatmul.bf16.gmra.mxu2 %v4169_v4  ;;  %v5270_v4 = vld [vmem:[%s7075_s3 + $0xd4] sm:$0xf] }
 0x243   : > { %v4209_v12 = vor.u32 %v5270_v4, %v4206_v5  ;;  %v5281_v4 = vld [vmem:[%s7075_s3 + $0x124] sm:$0xf0] }
 0x245   : > { %v1366_v6 = vpop.f32.mrf.mxu2 }
 0x246   : > { %v6016_v8 = vadd.f32 %v1366_v6, %v1177_v51 }
 0x247   : > { %1251 = vmatmul.bf16.gmra.mxu1 %v4221_v2 }
 0x24d   : > { %v1368_v13 = vpop.f32.mrf.mxu2 }
 0x24e   : > { %v6030_v14 = vadd.f32 %v1368_v13, %v1179_v53  ;;  %v1204_v53 = vpop.f32.mrf.mxu1 }
 0x250   : > { %v1546_v17 = vpack.c.bf16 %v6030_v14, %v6016_v8  ;;  %v5336_v14 = vld [vmem:[#allocation3 + $0xa0] sm:$0xff] }
 0x252   : > { %1410 = vmatmul.bf16.gmra.mxu2 %v4177_v15 }
 0x255   : > { %v1371_v20 = vpop.f32.mrf.mxu2 }
 0x256   : > { %v6034_v23 = vadd.f32 %v1371_v20, %v1182_v56  ;;  %v4198_v56 = vld [vmem:[%s7075_s3 + $0xc8] sm:$0xf0]  ;;  %v6078_v58 = vpop.f32.mrf.mxu1 }
 0x257   : > { %v4201_v62 = vor.u32 %v5268_v55, %v4198_v56  ;;  %1256 = vmatmul.bf16.gmra.mxu1 %v4229_v35  ;;  %v4246_v35 = vld [vmem:[%s7075_s3 + $0x128] sm:$0xf0] }
 0x25d   : > { %v1373_v28 = vpop.f32.mrf.mxu2 }
 0x25e   : > { %v6048_v18 = vadd.f32 %v1373_v28, %v1184_v61  ;;  %v1209_v3 = vpop.f32.mrf.mxu1 }
 0x260   : > { %v1547_v34 = vpack.c.bf16 %v6048_v18, %v6034_v23 }
 0x262   : > { %1415 = vmatmul.bf16.gmra.mxu2 %v4185_v32 }
 0x265   : > { %v1376_v36 = vpop.f32.mrf.mxu2 }
 0x266   : > { %v6052_v39 = vadd.f32 %v1376_v36, %v1187_v0 }
 0x26d   : > { %v1378_v43 = vpop.f32.mrf.mxu2 }
 0x26e   : > { %v6066_v48 = vadd.f32 %v1378_v43, %v1189_v7  ;;  %v6096_v7 = vpop.f32.mrf.mxu1  ;;  %v5274_v43 = vld [vmem:[%s7075_s3 + $0xf4] sm:$0xf] }
 0x270   : > { %v1548_v51 = vpack.c.bf16 %v6066_v48, %v6052_v39  ;;  %v4276_v39 = vld [vmem:[%s7075_s3 + $0x160] sm:$0xf]  ;;  %v5289_v48 = vld [vmem:[%s7075_s3 + $0x164] sm:$0xf0] }
 0x272   : > { %1420 = vmatmul.bf16.gmra.mxu2 %v4193_v49  ;;  %v4236_v49 = vld [vmem:[%s7075_s3 + $0x110] sm:$0xf] }
 0x273   : > { %v4237_v56 = vor.u32 %v5279_v50, %v4236_v49  ;;  %v5333_v50 = vld [vmem:[#allocation3 + $0x88] sm:$0xff] }
 0x275   : > { %v1381_v52 = vpop.f32.mrf.mxu2  ;;  %1261 = vmatmul.bf16.gmra.mxu1 %v4237_v56  ;;  %v5287_v56 = vld [vmem:[%s7075_s3 + $0x154] sm:$0xf0] }
 0x276   : > { %v6070_v54 = vadd.f32 %v1381_v52, %v1192_v11  ;;  %v1214_v20 = vpop.f32.mrf.mxu1 }
 0x27d   : > { %v1383_v57 = vpop.f32.mrf.mxu2 }
 0x27e   : > { %v6086_v61 = vadd.f32 %v1383_v57, %v1194_v21  ;;  %v5322_v21 = vld [vmem:[#allocation3 + $0x30] sm:$0xff]  ;;  %v1217_v28 = vpop.f32.mrf.mxu1 }
 0x27f   : > { %1712 = vmatpush.bf16.msrb.mxu3 %v5322_v21  ;;  %v5283_v21 = vld [vmem:[%s7075_s3 + $0x134] sm:$0xf0] }
 0x280   : > { %v1549_v0 = vpack.c.bf16 %v6086_v61, %v6070_v54  ;;  %v4284_v54 = vld [vmem:[%s7075_s3 + $0x170] sm:$0xf]  ;;  %v5291_v61 = vld [vmem:[%s7075_s3 + $0x174] sm:$0xf0] }
 0x282   : > { %1425 = vmatmul.bf16.gmra.mxu2 %v4201_v62  ;;  %v5276_v62 = vld [vmem:[%s7075_s3 + $0x104] sm:$0xf] }
 0x283   : > { %1713 = vmatpush.bf16.msrb.mxu3 %v5321_v22  ;;  %v4233_v9 = vor.u32 %v5276_v62, %v4230_v63 }
 0x285   : > { %v1386_v1 = vpop.f32.mrf.mxu2 }
 0x286   : > { %v1387_v13 = vadd.f32 %v1386_v1, %v1197_v29  ;;  %v5320_v29 = vld [vmem:[#allocation3 + $0x20] sm:$0xff]  ;;  %v1219_v40 = vpop.f32.mrf.mxu1 }
 0x287   : > { %1714 = vmatpush.bf16.msrb.mxu3 %v5320_v29 }
 0x28d   : > { %v1388_v6 = vpop.f32.mrf.mxu2 }
 0x28e   : > { %v1389_v11 = vadd.f32 %v1388_v6, %v1199_v37  ;;  %v5319_v37 = vld [vmem:[#allocation3 + $0x18] sm:$0xff]  ;;  %v1222_v46 = vpop.f32.mrf.mxu1 }
 0x28f   : > { %1715 = vmatpush.bf16.msrb.mxu3 %v5319_v37  ;;  %v5285_v37 = vld [vmem:[%s7075_s3 + $0x144] sm:$0xf0] }
 0x290   : > { %v1566_v15 = vpack.c.bf16 %v1389_v11, %v1387_v13 }
 0x292   : > { %1430 = vmatmul.bf16.gmra.mxu2 %v4209_v12  ;;  %1642 = vmatmul.bf16.vlgmr.msra.gmra.mxu3 %v1566_v15  ;;  %v5278_v15 = vld [vmem:[%s7075_s3 + $0x114] sm:$0xf] }
 0x293   : > { %1716 = vmatpush.bf16.msrb.mxu3 %v5318_v41  ;;  %v4241_v24 = vor.u32 %v5278_v15, %v4238_v16 }
 0x295   : > { %v1391_v19 = vpop.f32.mrf.mxu2 }
 0x296   : > { %v1392_v26 = vadd.f32 %v1391_v19, %v1202_v44  ;;  %v4222_v44 = vld [vmem:[%s7075_s3 + $0xf8] sm:$0xf0]  ;;  %v1224_v60 = vpop.f32.mrf.mxu1 }
 0x297   : > { %1717 = vmatpush.bf16.msrb.mxu3 %v5317_v42  ;;  %v4225_v55 = vor.u32 %v5274_v43, %v4222_v44  ;;  %v5335_v43 = vld [vmem:[#allocation3 + $0x98] sm:$0xff] }
 0x298   : > { %v5355_v44 = vld [vmem:[#allocation3 + $0x138] sm:$0xff] }
 0x299   : > { %2018 = vmatpush.bf16.msrb.mxu0 %v5355_v44 }
 0x29b   : > { %1718 = vmatpush.bf16.msrb.mxu3 %v5316_v47  ;;  %v5334_v47 = vld [vmem:[#allocation3 + $0x90] sm:$0xff] }
 0x29d   : > { %v1393_v27 = vpop.f32.mrf.mxu2 }
 0x29e   : > { %v1394_v32 = vadd.f32 %v1393_v27, %v1204_v53 }
 0x2a0   : > { %v1567_v36 = vpack.c.bf16 %v1394_v32, %v1392_v26  ;;  %v5337_v32 = vld [vmem:[#allocation3 + $0xa8] sm:$0xff] }
 0x2a2   : > { %1435 = vmatmul.bf16.gmra.mxu2 %v4217_v33  ;;  %1647 = vmatmul.bf16.gmra.mxu3 %v1567_v36  ;;  %v5280_v33 = vld [vmem:[%s7075_s3 + $0x124] sm:$0xf] }
 0x2a5   : > { %v1396_v38 = vpop.f32.mrf.mxu2 }
 0x2a6   : > { %v1397_v52 = vadd.f32 %v1396_v38, %v6078_v58  ;;  %v1227_v58 = vpop.f32.mrf.mxu1 }
 0x2ad   : > { %v1398_v45 = vpop.f32.mrf.mxu2 }
 0x2ae   : > { %v1399_v53 = vadd.f32 %v1398_v45, %v1209_v3  ;;  %v4244_v3 = vld [vmem:[%s7075_s3 + $0x120] sm:$0xf]  ;;  %v1229_v12 = vpop.f32.mrf.mxu1 }
 0x2af   : > { %v4245_v10 = vor.u32 %v5281_v4, %v4244_v3  ;;  %v5284_v3 = vld [vmem:[%s7075_s3 + $0x144] sm:$0xf]  ;;  %v4262_v4 = vld [vmem:[%s7075_s3 + $0x148] sm:$0xf0] }
 0x2b0   : > { %v1568_v57 = vpack.c.bf16 %v1399_v53, %v1397_v52  ;;  %v5282_v52 = vld [vmem:[%s7075_s3 + $0x134] sm:$0xf]  ;;  %v4254_v53 = vld [vmem:[%s7075_s3 + $0x138] sm:$0xf0] }
 0x2b1   : > { %1266 = vmatmul.bf16.gmra.mxu1 %v4245_v10  ;;  %v4277_v10 = vor.u32 %v5289_v48, %v4276_v39  ;;  %v5295_v48 = vld [vmem:[%s7075_s3 + $0x194] sm:$0xf0] }
 0x2b2   : > { %1440 = vmatmul.bf16.gmra.mxu2 %v4225_v55  ;;  %1652 = vmatmul.bf16.gmra.mxu3 %v1568_v57  ;;  %v4268_v55 = vld [vmem:[%s7075_s3 + $0x150] sm:$0xf] }
 0x2b5   : > { %v1401_v59 = vpop.f32.mrf.mxu2 }
 0x2b6   : > { %v1402_v5 = vadd.f32 %v1401_v59, %v6096_v7  ;;  %v1232_v19 = vpop.f32.mrf.mxu1  ;;  %v4257_v59 = vor.u32 %v5282_v52, %v4254_v53  ;;  %v5351_v52 = vld [vmem:[#allocation3 + $0x118] sm:$0xff] }
 0x2bd   : > { %v1403_v1 = vpop.f32.mrf.mxu2 }
 0x2be   : > { %v1404_v6 = vadd.f32 %v1403_v1, %v1214_v20  ;;  %v4252_v20 = vld [vmem:[%s7075_s3 + $0x130] sm:$0xf]  ;;  %v1234_v30 = vpop.f32.mrf.mxu1 }
 0x2bf   : > { %v4253_v25 = vor.u32 %v5283_v21, %v4252_v20 }
 0x2c0   : > { %v1569_v13 = vpack.c.bf16 %v1404_v6, %v1402_v5 }
 0x2c1   : > { %1271 = vmatmul.bf16.gmra.mxu1 %v4253_v25  ;;  %v4285_v25 = vor.u32 %v5291_v61, %v4284_v54 }
 0x2c2   : > { %1445 = vmatmul.bf16.gmra.mxu2 %v4233_v9  ;;  %1657 = vmatmul.bf16.gmra.mxu3 %v1569_v13  ;;  %v4265_v9 = vor.u32 %v5284_v3, %v4262_v4  ;;  %v5348_v3 = vld [vmem:[#allocation3 + $0x100] sm:$0xff]  ;;  %v4300_v4 = vld [vmem:[%s7075_s3 + $0x190] sm:$0xf] }
 0x2c5   : > { %v1406_v11 = vpop.f32.mrf.mxu2 }
 0x2c6   : > { %v6142_v2 = vadd.f32 %v1406_v11, %v1217_v28  ;;  %v5339_v28 = vld [vmem:[#allocation3 + $0xb8] sm:$0xff]  ;;  %v1237_v8 = vpop.f32.mrf.mxu1  ;;  %v5354_v11 = vld [vmem:[#allocation3 + $0x130] sm:$0xff] }
 0x2c7   : > { %1808 = vmatpush.bf16.msra.mxu3 %v5339_v28  ;;  %2019 = vmatpush.bf16.msrb.mxu0 %v5354_v11 }
 0x2cb   : > { %1809 = vmatpush.bf16.msra.mxu3 %v5338_v31 }
 0x2cd   : > { %v1408_v7 = vpop.f32.mrf.mxu2 }
 0x2ce   : > { %v6156_v22 = vadd.f32 %v1408_v7, %v1219_v40  ;;  %v4249_v40 = vor.u32 %v5280_v33, %v4246_v35  ;;  %v5286_v7 = vld [vmem:[%s7075_s3 + $0x154] sm:$0xf] }
 0x2cf   : > { %1810 = vmatpush.bf16.msra.mxu3 %v5337_v32  ;;  %v5346_v32 = vld [vmem:[#allocation3 + $0xf0] sm:$0xff] }
 0x2d0   : > { %v1740_v27 = vpack.c.bf16 %v6156_v22, %v6142_v2  ;;  %v4278_v2 = vld [vmem:[%s7075_s3 + $0x168] sm:$0xf0] }
 0x2d2   : > { %1450 = vmatmul.bf16.gmra.mxu2 %v4241_v24  ;;  %1719 = vmatmul.bf16.vlgmr.msrb.gmra.mxu3 %v1546_v17  ;;  %v4260_v17 = vld [vmem:[%s7075_s3 + $0x140] sm:$0xf] }
 0x2d3   : > { %v4261_v41 = vor.u32 %v5285_v37, %v4260_v17  ;;  %1811 = vmatpush.bf16.msra.mxu3 %v5336_v14  ;;  %v5288_v14 = vld [vmem:[%s7075_s3 + $0x164] sm:$0xf] }
 0x2d4   : > { %v5344_v17 = vld [vmem:[#allocation3 + $0xe0] sm:$0xff] }
 0x2d5   : > { %v1411_v29 = vpop.f32.mrf.mxu2  ;;  %1276 = vmatmul.bf16.gmra.mxu1 %v4261_v41  ;;  %v5352_v37 = vld [vmem:[#allocation3 + $0x120] sm:$0xff] }
 0x2d6   : > { %v6163_v26 = vadd.f32 %v1411_v29, %v1222_v46  ;;  %v1239_v46 = vpop.f32.mrf.mxu1  ;;  %v5347_v29 = vld [vmem:[#allocation3 + $0xf8] sm:$0xff] }
 0x2d7   : > { %1812 = vmatpush.bf16.msra.mxu3 %v5335_v43  ;;  %v4281_v43 = vor.u32 %v5288_v14, %v4278_v2 }
 0x2db   : > { %1813 = vmatpush.bf16.msra.mxu3 %v5334_v47 }
 0x2dd   : > { %v1413_v36 = vpop.f32.mrf.mxu2 }
 0x2de   : > { %v6177_v38 = vadd.f32 %v1413_v36, %v1224_v60  ;;  %v1242_v18 = vpop.f32.mrf.mxu1  ;;  %v4269_v60 = vor.u32 %v5287_v56, %v4268_v55  ;;  %v5353_v36 = vld [vmem:[#allocation3 + $0x128] sm:$0xff] }
 0x2df   : > { %1814 = vmatpush.bf16.msra.mxu3 %v5333_v50  ;;  %2020 = vmatpush.bf16.msrb.mxu0 %v5353_v36  ;;  %v5343_v50 = vld [vmem:[#allocation3 + $0xd8] sm:$0xff]  ;;  %v5294_v36 = vld [vmem:[%s7075_s3 + $0x194] sm:$0xf] }
 0x2e0   : > { %v1741_v42 = vpack.c.bf16 %v6177_v38, %v6163_v26  ;;  %v5290_v26 = vld [vmem:[%s7075_s3 + $0x174] sm:$0xf]  ;;  %v4286_v38 = vld [vmem:[%s7075_s3 + $0x178] sm:$0xf0] }
 0x2e2   : > { %1455 = vmatmul.bf16.gmra.mxu2 %v4249_v40  ;;  %1724 = vmatmul.bf16.gmra.mxu3 %v1547_v34  ;;  %v5332_v34 = vld [vmem:[#allocation3 + $0x80] sm:$0xff] }
 0x2e3   : > { %1815 = vmatpush.bf16.msra.mxu3 %v5332_v34  ;;  %v4292_v40 = vld [vmem:[%s7075_s3 + $0x180] sm:$0xf]  ;;  %2021 = vmatpush.bf16.msrb.mxu0 %v5352_v37  ;;  %v5350_v34 = vld [vmem:[#allocation3 + $0x110] sm:$0xff]  ;;  %v5299_v37 = vld [vmem:[%s7075_s3 + $0x1b4] sm:$0xf0] }
 0x2e5   : > { %v1416_v45 = vpop.f32.mrf.mxu2  ;;  %1281 = vmatmul.bf16.gmra.mxu1 %v4269_v60  ;;  %v5349_v60 = vld [vmem:[#allocation3 + $0x108] sm:$0xff] }
 0x2e6   : > { %v6184_v49 = vadd.f32 %v1416_v45, %v1227_v58  ;;  %v1244_v1 = vpop.f32.mrf.mxu1  ;;  %v5293_v45 = vld [vmem:[%s7075_s3 + $0x184] sm:$0xf0] }
 0x2e7   : > { %1913 = vmatpush.bf16.msrb.mxu3 %v5347_v29  ;;  %2022 = vmatpush.bf16.msrb.mxu0 %v5351_v52 }
 0x2eb   : > { %1914 = vmatpush.bf16.msrb.mxu3 %v5346_v32  ;;  %2023 = vmatpush.bf16.msrb.mxu0 %v5350_v34  ;;  %v5296_v34 = vld [vmem:[%s7075_s3 + $0x1a4] sm:$0xf] }
 0x2ed   : > { %v1418_v23 = vpop.f32.mrf.mxu2 }
 0x2ee   : > { %v6198_v57 = vadd.f32 %v1418_v23, %v1229_v12  ;;  %v6213_v6 = vpop.f32.mrf.mxu1 }
 0x2ef   : > { %2024 = vmatpush.bf16.msrb.mxu0 %v5349_v60 }
 0x2f0   : > { %v1742_v62 = vpack.c.bf16 %v6198_v57, %v6184_v49 }
 0x2f2   : > { %1460 = vmatmul.bf16.gmra.mxu2 %v4257_v59  ;;  %1729 = vmatmul.bf16.gmra.mxu3 %v1548_v51  ;;  %v5341_v59 = vld [vmem:[#allocation3 + $0xc8] sm:$0xff] }
 0x2f3   : > { %2025 = vmatpush.bf16.msrb.mxu0 %v5348_v3 }
 0x2f5   : > { %v1421_v63 = vpop.f32.mrf.mxu2  ;;  %1286 = vmatmul.bf16.gmra.mxu1 %v4277_v10 }
 0x2f6   : > { %v6205_v58 = vadd.f32 %v1421_v63, %v1232_v19  ;;  %v6228_v15 = vpop.f32.mrf.mxu1  ;;  %v4270_v19 = vld [vmem:[%s7075_s3 + $0x158] sm:$0xf0] }
 0x2f7   : > { %v4273_v24 = vor.u32 %v5286_v7, %v4270_v19  ;;  %v5292_v19 = vld [vmem:[%s7075_s3 + $0x184] sm:$0xf] }
 0x2fd   : > { %v1423_v5 = vpop.f32.mrf.mxu2 }
 0x2fe   : > { %v6221_v51 = vadd.f32 %v1423_v5, %v1234_v30  ;;  %v6238_v21 = vpop.f32.mrf.mxu1 }
 0x300   : > { %v1743_v13 = vpack.c.bf16 %v6221_v51, %v6205_v58 }
 0x302   : > { %1465 = vmatmul.bf16.gmra.mxu2 %v4265_v9  ;;  %1734 = vmatmul.bf16.gmra.mxu3 %v1549_v0  ;;  %v4301_v9 = vor.u32 %v5295_v48, %v4300_v4 }
 0x305   : > { %v1426_v12 = vpop.f32.mrf.mxu2  ;;  %1291 = vmatmul.bf16.gmra.mxu1 %v4285_v25 }
 0x306   : > { %v6230_v16 = vadd.f32 %v1426_v12, %v1237_v8  ;;  %v6257_v35 = vpop.f32.mrf.mxu1  ;;  %v5345_v8 = vld [vmem:[#allocation3 + $0xe8] sm:$0xff] }
 0x307   : > { %1915 = vmatpush.bf16.msrb.mxu3 %v5345_v8  ;;  %v4302_v8 = vld [vmem:[%s7075_s3 + $0x198] sm:$0xf0] }
 0x308   : > { %v4305_v58 = vor.u32 %v5294_v36, %v4302_v8 }
 0x30b   : > { %1916 = vmatpush.bf16.msrb.mxu3 %v5344_v17 }
 0x30d   : > { %v1428_v20 = vpop.f32.mrf.mxu2 }
 0x30e   : > { %v6246_v0 = vadd.f32 %v1428_v20, %v1239_v46  ;;  %v6272_v44 = vpop.f32.mrf.mxu1  ;;  %v4293_v46 = vor.u32 %v5293_v45, %v4292_v40  ;;  %v4294_v20 = vld [vmem:[%s7075_s3 + $0x188] sm:$0xf0] }
 0x30f   : > { %1917 = vmatpush.bf16.msrb.mxu3 %v5343_v50  ;;  %v4297_v57 = vor.u32 %v5292_v19, %v4294_v20  ;;  %v5298_v19 = vld [vmem:[%s7075_s3 + $0x1b4] sm:$0xf] }
 0x310   : > { %v1845_v28 = vpack.c.bf16 %v6246_v0, %v6230_v16  ;;  %v4310_v16 = vld [vmem:[%s7075_s3 + $0x1a8] sm:$0xf0] }
 0x311   : > { %v4313_v60 = vor.u32 %v5296_v34, %v4310_v16 }
 0x312   : > { %1470 = vmatmul.bf16.gmra.mxu2 %v4273_v24  ;;  %1816 = vmatmul.bf16.vlgmr.msra.gmra.mxu3 %v1740_v27  ;;  %v5297_v24 = vld [vmem:[%s7075_s3 + $0x1a4] sm:$0xf0] }
 0x315   : > { %v1431_v30 = vpop.f32.mrf.mxu2  ;;  %v6253_v31 = vpop.f32.mrf.mxu3  ;;  %1296 = vmatmul.bf16.gmra.mxu1 %v4293_v46 }
 0x316   : > { %v6255_v33 = vadd.f32 %v1431_v30, %v1242_v18  ;;  %v5342_v18 = vld [vmem:[#allocation3 + $0xd0] sm:$0xff]  ;;  %v1259_v56 = vpop.f32.mrf.mxu1 }
 0x317   : > { %1918 = vmatpush.bf16.msrb.mxu3 %v5342_v18  ;;  %v5361_v18 = vld [vmem:[#allocation3 + $0x168] sm:$0xff] }
 0x31b   : > { %1919 = vmatpush.bf16.msrb.mxu3 %v5341_v59 }
 0x31d   : > { %v1433_v22 = vpop.f32.mrf.mxu2  ;;  %v6265_v27 = vpop.f32.mrf.mxu3 }
 0x31e   : > { %v6270_v41 = vadd.f32 %v1433_v22, %v1244_v1  ;;  %v5340_v1 = vld [vmem:[#allocation3 + $0xc0] sm:$0xff]  ;;  %v1262_v39 = vpop.f32.mrf.mxu1 }
 0x31f   : > { %1920 = vmatpush.bf16.msrb.mxu3 %v5340_v1  ;;  %v5301_v1 = vld [vmem:[%s7075_s3 + $0x1c4] sm:$0xf0] }
 0x320   : > { %v1846_v47 = vpack.c.bf16 %v6270_v41, %v6255_v33  ;;  %v4318_v33 = vld [vmem:[%s7075_s3 + $0x1b8] sm:$0xf0] }
 0x322   : > { %1475 = vmatmul.bf16.gmra.mxu2 %v4281_v43  ;;  %1821 = vmatmul.bf16.gmra.mxu3 %v1741_v42 }
 0x325   : > { %v1436_v53 = vpop.f32.mrf.mxu2  ;;  %v6282_v23 = vpop.f32.mrf.mxu3  ;;  %1301 = vmatmul.bf16.gmra.mxu1 %v4301_v9 }
 0x326   : > { %v6285_v55 = vadd.f32 %v1436_v53, %v6213_v6  ;;  %v4289_v6 = vor.u32 %v5290_v26, %v4286_v38  ;;  %v1264_v7 = vpop.f32.mrf.mxu1  ;;  %v5362_v53 = vld [vmem:[#allocation3 + $0x170] sm:$0xff]  ;;  %v5360_v38 = vld [vmem:[#allocation3 + $0x160] sm:$0xff] }
 0x32d   : > { %v1438_v42 = vpop.f32.mrf.mxu2  ;;  %v6293_v63 = vpop.f32.mrf.mxu3 }
 0x32e   : > { %v6299_v5 = vadd.f32 %v1438_v42, %v6228_v15  ;;  %v4324_v42 = vld [vmem:[%s7075_s3 + $0x1c0] sm:$0xf] }
 0x32f   : > { %v4325_v3 = vor.u32 %v5301_v1, %v4324_v42 }
 0x330   : > { %v1847_v10 = vpack.c.bf16 %v6299_v5, %v6285_v55 }
 0x332   : > { %1480 = vmatmul.bf16.gmra.mxu2 %v4289_v6  ;;  %1826 = vmatmul.bf16.gmra.mxu3 %v1742_v62  ;;  %v6325_v62 = vpop.f32.mrf.mxu1 }
 0x335   : > { %v1441_v11 = vpop.f32.mrf.mxu2  ;;  %v6309_v12 = vpop.f32.mrf.mxu3 }
 0x336   : > { %v6312_v15 = vadd.f32 %v1441_v11, %v6238_v21  ;;  %v4308_v21 = vld [vmem:[%s7075_s3 + $0x1a0] sm:$0xf]  ;;  %v5358_v11 = vld [vmem:[#allocation3 + $0x150] sm:$0xff] }
 0x337   : > { %v4309_v25 = vor.u32 %v5297_v24, %v4308_v21  ;;  %v5356_v24 = vld [vmem:[#allocation3 + $0x140] sm:$0xff] }
 0x339   : > { %1306 = vmatmul.bf16.gmra.mxu1 %v4309_v25  ;;  %v4332_v25 = vld [vmem:[%s7075_s3 + $0x1d0] sm:$0xf] }
 0x33d   : > { %v1443_v54 = vpop.f32.mrf.mxu2  ;;  %v6320_v61 = vpop.f32.mrf.mxu3 }
 0x33e   : > { %v6323_v49 = vadd.f32 %v1443_v54, %v6257_v35  ;;  %v1269_v35 = vpop.f32.mrf.mxu1 }
 0x340   : > { %v1848_v29 = vpack.c.bf16 %v6323_v49, %v6312_v15 }
 0x342   : > { %1485 = vmatmul.bf16.gmra.mxu2 %v4297_v57  ;;  %1831 = vmatmul.bf16.gmra.mxu3 %v1743_v13  ;;  %v4316_v13 = vld [vmem:[%s7075_s3 + $0x1b0] sm:$0xf]  ;;  %v4321_v57 = vor.u32 %v5298_v19, %v4318_v33  ;;  %v5368_v33 = vld [vmem:[#allocation3 + $0x1a0] sm:$0xff] }
 0x343   : > { %v4317_v40 = vor.u32 %v5299_v37, %v4316_v13 }
 0x345   : > { %v1446_v30 = vpop.f32.mrf.mxu2  ;;  %v6338_v32 = vpop.f32.mrf.mxu3 }
 0x346   : > { %v1447_v22 = vadd.f32 %v1446_v30, %v6272_v44  ;;  %v6349_v51 = vpop.f32.mrf.mxu1  ;;  %v5363_v44 = vld [vmem:[#allocation3 + $0x178] sm:$0xff] }
 0x347   : > { %2123 = vmatpush.bf16.msra.mxu3 %v5363_v44  ;;  %v5303_v30 = vld [vmem:[%s7075_s3 + $0x1d4] sm:$0xf0] }
 0x348   : > { %v4333_v36 = vor.u32 %v5303_v30, %v4332_v25 }
 0x349   : > { %1311 = vmatmul.bf16.gmra.mxu1 %v4317_v40  ;;  %v4340_v40 = vld [vmem:[%s7075_s3 + $0x1e0] sm:$0xf] }
 0x34b   : > { %2124 = vmatpush.bf16.msra.mxu3 %v5362_v53  ;;  %v5302_v53 = vld [vmem:[%s7075_s3 + $0x1d4] sm:$0xf] }
 0x34d   : > { %v1448_v14 = vpop.f32.mrf.mxu2  ;;  %v6346_v2 = vpop.f32.mrf.mxu3 }
 0x34e   : > { %v1449_v17 = vadd.f32 %v1448_v14, %v1259_v56  ;;  %v1274_v52 = vpop.f32.mrf.mxu1 }
 0x34f   : > { %2125 = vmatpush.bf16.msra.mxu3 %v5361_v18  ;;  %v4334_v18 = vld [vmem:[%s7075_s3 + $0x1d8] sm:$0xf0] }
 0x350   : > { %v1950_v43 = vpack.c.bf16 %v1449_v17, %v1447_v22  ;;  %v5300_v22 = vld [vmem:[%s7075_s3 + $0x1c4] sm:$0xf]  ;;  %v4326_v17 = vld [vmem:[%s7075_s3 + $0x1c8] sm:$0xf0] }
 0x351   : > { %v4329_v37 = vor.u32 %v5300_v22, %v4326_v17 }
 0x352   : > { %1490 = vmatmul.bf16.gmra.mxu2 %v4305_v58  ;;  %1921 = vmatmul.bf16.vlgmr.msrb.gmra.mxu3 %v1845_v28 }
 0x353   : > { %2026 = vmatmul.bf16.vlgmr.msrb.gmra.mxu0 %v1950_v43  ;;  %2126 = vmatpush.bf16.msra.mxu3 %v5360_v38  ;;  %v5305_v43 = vld [vmem:[%s7075_s3 + $0x1e4] sm:$0xf0] }
 0x354   : > { %v4341_v44 = vor.u32 %v5305_v43, %v4340_v40 }
 0x355   : > { %v1451_v45 = vpop.f32.mrf.mxu2  ;;  %v1720_v46 = vpop.f32.mrf.mxu3 }
 0x356   : > { %v6361_v50 = vadd.f32 %v1720_v46, %v6253_v31  ;;  %v1452_v56 = vadd.f32 %v1451_v45, %v1262_v39  ;;  %v6372_v26 = vpop.f32.mrf.mxu1 }
 0x359   : > { %1316 = vmatmul.bf16.gmra.mxu1 %v4325_v3  ;;  %v5370_v3 = vld [vmem:[#allocation3 + $0x1b0] sm:$0xff] }
 0x35d   : > { %v1453_v0 = vpop.f32.mrf.mxu2  ;;  %v1722_v28 = vpop.f32.mrf.mxu3 }
 0x35e   : > { %v1454_v59 = vadd.f32 %v1453_v0, %v1264_v7  ;;  %v6370_v31 = vadd.f32 %v1722_v28, %v6265_v27  ;;  %v5359_v27 = vld [vmem:[#allocation3 + $0x158] sm:$0xff]  ;;  %v1279_v9 = vpop.f32.mrf.mxu1  ;;  %v5357_v7 = vld [vmem:[#allocation3 + $0x148] sm:$0xff]  ;;  %v4337_v0 = vor.u32 %v5302_v53, %v4334_v18  ;;  %v4348_v28 = vld [vmem:[%s7075_s3 + $0x1f0] sm:$0xf] }
 0x35f   : > { %2127 = vmatpush.bf16.msra.mxu3 %v5359_v27  ;;  %v5304_v27 = vld [vmem:[%s7075_s3 + $0x1e4] sm:$0xf] }
 0x360   : > { %v1951_v4 = vpack.c.bf16 %v1454_v59, %v1452_v56  ;;  %v5307_v56 = vld [vmem:[%s7075_s3 + $0x1f4] sm:$0xf0] }
 0x361   : > { %v4349_v59 = vor.u32 %v5307_v56, %v4348_v28 }
 0x362   : > { %1495 = vmatmul.bf16.gmra.mxu2 %v4313_v60  ;;  %1926 = vmatmul.bf16.gmra.mxu3 %v1846_v47 }
 0x363   : > { %2031 = vmatmul.bf16.gmra.mxu0 %v1951_v4  ;;  %2128 = vmatpush.bf16.msra.mxu3 %v5358_v11  ;;  %v5369_v4 = vld [vmem:[#allocation3 + $0x1a8] sm:$0xff] }
 0x365   : > { %v1456_v6 = vpop.f32.mrf.mxu2  ;;  %v1725_v39 = vpop.f32.mrf.mxu3 }
 0x366   : > { %v6384_v48 = vadd.f32 %v1725_v39, %v6282_v23  ;;  %v1457_v20 = vadd.f32 %v1456_v6, %v6325_v62  ;;  %v6396_v21 = vpop.f32.mrf.mxu1  ;;  %v4342_v6 = vld [vmem:[%s7075_s3 + $0x1e8] sm:$0xf0] }
 0x367   : > { %2129 = vmatpush.bf16.msra.mxu3 %v5357_v7  ;;  %v4345_v7 = vor.u32 %v5304_v27, %v4342_v6 }
 0x369   : > { %1321 = vmatmul.bf16.gmra.mxu1 %v4333_v36  ;;  %v5366_v36 = vld [vmem:[#allocation3 + $0x190] sm:$0xff] }
 0x36b   : > { %2130 = vmatpush.bf16.msra.mxu3 %v5356_v24 }
 0x36d   : > { %v1458_v41 = vpop.f32.mrf.mxu2  ;;  %v1727_v47 = vpop.f32.mrf.mxu3 }
 0x36e   : > { %v1459_v54 = vadd.f32 %v1458_v41, %v1269_v35  ;;  %v6394_v23 = vadd.f32 %v1727_v47, %v6293_v63  ;;  %v1284_v14 = vpop.f32.mrf.mxu1  ;;  %v4356_v41 = vld [vmem:[%s7075_s3 + $0x200] sm:$0xf]  ;;  %v5309_v47 = vld [vmem:[%s7075_s3 + $0x204] sm:$0xf0] }
 0x370   : > { %v1952_v8 = vpack.c.bf16 %v1459_v54, %v1457_v20  ;;  %v4357_v20 = vor.u32 %v5309_v47, %v4356_v41 }
 0x372   : > { %1500 = vmatmul.bf16.gmra.mxu2 %v4321_v57  ;;  %1931 = vmatmul.bf16.gmra.mxu3 %v1847_v10  ;;  %v5367_v57 = vld [vmem:[#allocation3 + $0x198] sm:$0xff] }
 0x373   : > { %2036 = vmatmul.bf16.gmra.mxu0 %v1952_v8  ;;  %v5365_v8 = vld [vmem:[#allocation3 + $0x188] sm:$0xff] }
 0x375   : > { %v1461_v63 = vpop.f32.mrf.mxu2  ;;  %v1730_v62 = vpop.f32.mrf.mxu3 }
 0x376   : > { %v6408_v35 = vadd.f32 %v1730_v62, %v6309_v12  ;;  %v1462_v55 = vadd.f32 %v1461_v63, %v6349_v51  ;;  %v6420_v12 = vpop.f32.mrf.mxu1  ;;  %v5306_v63 = vld [vmem:[%s7075_s3 + $0x1f4] sm:$0xf]  ;;  %v4350_v62 = vld [vmem:[%s7075_s3 + $0x1f8] sm:$0xf0] }
 0x379   : > { %1326 = vmatmul.bf16.gmra.mxu1 %v4341_v44 }
 0x37d   : > { %v1463_v58 = vpop.f32.mrf.mxu2  ;;  %v1732_v13 = vpop.f32.mrf.mxu3 }
 0x37e   : > { %v1464_v5 = vadd.f32 %v1463_v58, %v1274_v52  ;;  %v6418_v10 = vadd.f32 %v1732_v13, %v6320_v61  ;;  %v1289_v52 = vpop.f32.mrf.mxu1  ;;  %v4353_v58 = vor.u32 %v5306_v63, %v4350_v62  ;;  %v4374_v63 = vld [vmem:[%s7075_s3 + $0x228] sm:$0xf0] }
 0x380   : > { %v1953_v45 = vpack.c.bf16 %v1464_v5, %v1462_v55  ;;  %v5364_v55 = vld [vmem:[#allocation3 + $0x180] sm:$0xff]  ;;  %v4364_v5 = vld [vmem:[%s7075_s3 + $0x210] sm:$0xf] }
 0x382   : > { %1505 = vmatmul.bf16.gmra.mxu2 %v4329_v37  ;;  %1936 = vmatmul.bf16.gmra.mxu3 %v1848_v29  ;;  %v5311_v37 = vld [vmem:[%s7075_s3 + $0x214] sm:$0xf0] }
 0x383   : > { %2041 = vmatmul.bf16.gmra.mxu0 %v1953_v45  ;;  %v4365_v40 = vor.u32 %v5311_v37, %v4364_v5 }
 0x385   : > { %v1466_v61 = vpop.f32.mrf.mxu2  ;;  %v1735_v51 = vpop.f32.mrf.mxu3 }
 0x386   : > { %v6432_v46 = vadd.f32 %v1735_v51, %v6338_v32  ;;  %v1467_v15 = vadd.f32 %v1466_v61, %v6372_v26  ;;  %v6444_v32 = vpop.f32.mrf.mxu1  ;;  %v5371_v26 = vld [vmem:[#allocation3 + $0x1b8] sm:$0xff]  ;;  %v5308_v51 = vld [vmem:[%s7075_s3 + $0x204] sm:$0xf] }
 0x387   : > { %2228 = vmatpush.bf16.msra.mxu0 %v5371_v26 }
 0x389   : > { %1331 = vmatmul.bf16.gmra.mxu1 %v4349_v59 }
 0x38b   : > { %2229 = vmatpush.bf16.msra.mxu0 %v5370_v3  ;;  %v4366_v3 = vld [vmem:[%s7075_s3 + $0x218] sm:$0xf0] }
 0x38d   : > { %v1468_v34 = vpop.f32.mrf.mxu2  ;;  %v1737_v16 = vpop.f32.mrf.mxu3 }
 0x38e   : > { %v1469_v49 = vadd.f32 %v1468_v34, %v1279_v9  ;;  %v6442_v29 = vadd.f32 %v1737_v16, %v6346_v2  ;;  %v1294_v1 = vpop.f32.mrf.mxu1 }
 0x38f   : > { %2230 = vmatpush.bf16.msra.mxu0 %v5369_v4 }
 0x390   : > { %v2055_v60 = vpack.c.bf16 %v1469_v49, %v1467_v15 }
 0x392   : > { %1510 = vmatmul.bf16.gmra.mxu2 %v4337_v0  ;;  %2131 = vmatmul.bf16.vlgmr.msra.gmra.mxu3 %v2055_v60  ;;  %v5313_v0 = vld [vmem:[%s7075_s3 + $0x224] sm:$0xf0] }
 0x393   : > { %2231 = vmatpush.bf16.msra.mxu0 %v5368_v33 }
 0x395   : > { %v1471_v2 = vpop.f32.mrf.mxu2  ;;  %v1817_v38 = vpop.f32.mrf.mxu3 }
 0x396   : > { %v6453_v42 = vadd.f32 %v1817_v38, %v6361_v50  ;;  %v1472_v11 = vadd.f32 %v1471_v2, %v6396_v21  ;;  %v6464_v19 = vpop.f32.mrf.mxu1  ;;  %v5476_v38 = vld [vmem:[%s7079_s7 + $0x2b8] sm:$0xff] }
 0x397   : > { %2232 = vmatpush.bf16.msra.mxu0 %v5367_v57  ;;  %3760 = vmatpush.bf16.msrb.mxu1 %v5476_v38 }
 0x399   : > { %1336 = vmatmul.bf16.gmra.mxu1 %v4357_v20  ;;  %v5379_v20 = vld [vmem:[#allocation3 + $0x1f8] sm:$0xff] }
 0x39a   : > { %2333 = vmatpush.bf16.msrb.mxu3 %v5379_v20 }
 0x39b   : > { %2233 = vmatpush.bf16.msra.mxu0 %v5366_v36 }
 0x39d   : > { %v1473_v39 = vpop.f32.mrf.mxu2  ;;  %v6461_v9 = vpop.f32.mrf.mxu3 }
 0x39e   : > { %v1474_v50 = vadd.f32 %v1473_v39, %v1284_v14  ;;  %v1299_v30 = vpop.f32.mrf.mxu1 }
 0x39f   : > { %2234 = vmatpush.bf16.msra.mxu0 %v5365_v8  ;;  %v5312_v8 = vld [vmem:[%s7075_s3 + $0x224] sm:$0xf] }
 0x3a0   : > { %v2056_v54 = vpack.c.bf16 %v1474_v50, %v1472_v11  ;;  %v4380_v11 = vld [vmem:[%s7075_s3 + $0x230] sm:$0xf]  ;;  %v5315_v50 = vld [vmem:[%s7075_s3 + $0x234] sm:$0xf0] }
 0x3a2   : > { %1515 = vmatmul.bf16.gmra.mxu2 %v4345_v7  ;;  %2136 = vmatmul.bf16.gmra.mxu3 %v2056_v54  ;;  %v4381_v7 = vor.u32 %v5315_v50, %v4380_v11 }
 0x3a3   : > { %2235 = vmatpush.bf16.msra.mxu0 %v5364_v55  ;;  %v5376_v55 = vld [vmem:[#allocation3 + $0x1e0] sm:$0xff] }
 0x3a5   : > { %v1476_v21 = vpop.f32.mrf.mxu2  ;;  %v1822_v24 = vpop.f32.mrf.mxu3 }
 0x3a6   : > { %v6473_v25 = vadd.f32 %v1822_v24, %v6384_v48  ;;  %v1477_v17 = vadd.f32 %v1476_v21, %v6420_v12  ;;  %v6484_v13 = vpop.f32.mrf.mxu1  ;;  %v5378_v21 = vld [vmem:[#allocation3 + $0x1f0] sm:$0xff] }
 0x3a7   : > { %2334 = vmatpush.bf16.msrb.mxu3 %v5378_v21 }
 0x3a9   : > { %1341 = vmatmul.bf16.gmra.mxu1 %v4365_v40  ;;  %v5375_v40 = vld [vmem:[#allocation3 + $0x1d8] sm:$0xff] }
 0x3ad   : > { %v1478_v14 = vpop.f32.mrf.mxu2  ;;  %v6481_v22 = vpop.f32.mrf.mxu3 }
 0x3ae   : > { %v1479_v48 = vadd.f32 %v1478_v14, %v1289_v52  ;;  %v1304_v61 = vpop.f32.mrf.mxu1  ;;  %v4358_v52 = vld [vmem:[%s7075_s3 + $0x208] sm:$0xf0] }
 0x3af   : > { %v4361_v15 = vor.u32 %v5308_v51, %v4358_v52  ;;  %v5374_v52 = vld [vmem:[#allocation3 + $0x1d0] sm:$0xff] }
 0x3b0   : > { %v2057_v43 = vpack.c.bf16 %v1479_v48, %v1477_v17 }
 0x3b2   : > { %1520 = vmatmul.bf16.gmra.mxu2 %v4353_v58  ;;  %2141 = vmatmul.bf16.gmra.mxu3 %v2057_v43  ;;  %v4377_v58 = vor.u32 %v5312_v8, %v4374_v63 }
 0x3b5   : > { %v1481_v12 = vpop.f32.mrf.mxu2  ;;  %v1827_v44 = vpop.f32.mrf.mxu3 }
 0x3b6   : > { %v6493_v45 = vadd.f32 %v1827_v44, %v6408_v35  ;;  %v1482_v34 = vadd.f32 %v1481_v12, %v6444_v32  ;;  %v6504_v49 = vpop.f32.mrf.mxu1  ;;  %v4372_v35 = vld [vmem:[%s7075_s3 + $0x220] sm:$0xf]  ;;  %v5484_v32 = vld [vmem:[%s7079_s7 + $0x2f8] sm:$0xff] }
 0x3b7   : > { %v4373_v28 = vor.u32 %v5313_v0, %v4372_v35  ;;  %3773 = vmatpush.bf16.msrb.mxu2 %v5484_v32 }
 0x3b9   : > { %1346 = vmatmul.bf16.gmra.mxu1 %v4373_v28 }
 0x3bd   : > { %v1483_v53 = vpop.f32.mrf.mxu2  ;;  %v6501_v18 = vpop.f32.mrf.mxu3 }
 0x3be   : > { %v1484_v16 = vadd.f32 %v1483_v53, %v1294_v1  ;;  %v1309_v2 = vpop.f32.mrf.mxu1  ;;  %v5310_v1 = vld [vmem:[%s7075_s3 + $0x214] sm:$0xf] }
 0x3bf   : > { %v4369_v39 = vor.u32 %v5310_v1, %v4366_v3 }
 0x3c0   : > { %v2058_v56 = vpack.c.bf16 %v1484_v16, %v1482_v34  ;;  %v5314_v34 = vld [vmem:[%s7075_s3 + $0x234] sm:$0xf]  ;;  %v4382_v16 = vld [vmem:[%s7075_s3 + $0x238] sm:$0xf0] }
 0x3c1   : > { %v4385_v28 = vor.u32 %v5314_v34, %v4382_v16 }
 0x3c2   : > { %1525 = vmatmul.bf16.gmra.mxu2 %v4361_v15  ;;  %2146 = vmatmul.bf16.gmra.mxu3 %v2058_v56  ;;  %v5372_v56 = vld [vmem:[#allocation3 + $0x1c0] sm:$0xff] }
 0x3c5   : > { %v1486_v59 = vpop.f32.mrf.mxu2  ;;  %v1832_v60 = vpop.f32.mrf.mxu3 }
 0x3c6   : > { %v6516_v26 = vadd.f32 %v1832_v60, %v6432_v46  ;;  %v1487_v46 = vadd.f32 %v1486_v59, %v6464_v19  ;;  %v1312_v47 = vpop.f32.mrf.mxu1 }
 0x3c9   : > { %1351 = vmatmul.bf16.gmra.mxu1 %v4381_v7 }
 0x3cd   : > { %v1488_v4 = vpop.f32.mrf.mxu2  ;;  %v6527_v27 = vpop.f32.mrf.mxu3 }
 0x3ce   : > { %v1489_v6 = vadd.f32 %v1488_v4, %v1299_v30  ;;  %v5377_v30 = vld [vmem:[#allocation3 + $0x1e8] sm:$0xff]  ;;  %v1314_v62 = vpop.f32.mrf.mxu1 }
 0x3cf   : > { %2335 = vmatpush.bf16.msrb.mxu3 %v5377_v30 }
 0x3d0   : > { %v2160_v33 = vpack.c.bf16 %v1489_v6, %v1487_v46  ;;  %v2027_v41 = vpop.f32.mrf.mxu0 }
 0x3d2   : > { %1530 = vmatmul.bf16.gmra.mxu2 %v4369_v39  ;;  %2236 = vmatmul.bf16.vlgmr.msra.gmra.mxu0 %v2160_v33 }
 0x3d3   : > { %2336 = vmatpush.bf16.msrb.mxu3 %v5376_v55 }
 0x3d5   : > { %v1491_v19 = vpop.f32.mrf.mxu2  ;;  %v1922_v54 = vpop.f32.mrf.mxu3 }
 0x3d6   : > { %v1942_v57 = vadd.f32 %v1922_v54, %v6453_v42  ;;  %v1492_v42 = vadd.f32 %v1491_v19, %v6484_v13  ;;  %v1317_v51 = vpop.f32.mrf.mxu1  ;;  %v5373_v13 = vld [vmem:[#allocation3 + $0x1c8] sm:$0xff] }
 0x3d7   : > { %2337 = vmatpush.bf16.msrb.mxu3 %v5375_v40 }
 0x3d8   : > { %v6537_v24 = vpop.f32.mrf.mxu0  ;;  %v6539_v36 = vadd.f32 %v2027_v41, %v1942_v57 }
 0x3db   : > { %2338 = vmatpush.bf16.msrb.mxu3 %v5374_v52 }
 0x3dd   : > { %v1493_v14 = vpop.f32.mrf.mxu2  ;;  %v6547_v17 = vpop.f32.mrf.mxu3 }
 0x3de   : > { %v1494_v48 = vadd.f32 %v1493_v14, %v1304_v61  ;;  %v1319_v59 = vpop.f32.mrf.mxu1 }
 0x3df   : > { %2339 = vmatpush.bf16.msrb.mxu3 %v5373_v13  ;;  %v5383_v13 = vld [vmem:[#allocation3 + $0x218] sm:$0xff] }
 0x3e0   : > { %v2161_v5 = vpack.c.bf16 %v1494_v48, %v1492_v42  ;;  %v2032_v37 = vpop.f32.mrf.mxu0 }
 0x3e2   : > { %1535 = vmatmul.bf16.gmra.mxu2 %v4377_v58  ;;  %2241 = vmatmul.bf16.gmra.mxu0 %v2161_v5  ;;  %v5386_v58 = vld [vmem:[#allocation3 + $0x230] sm:$0xff]  ;;  %v5385_v5 = vld [vmem:[#allocation3 + $0x228] sm:$0xff] }
 0x3e3   : > { %2340 = vmatpush.bf16.msrb.mxu3 %v5372_v56 }
 0x3e5   : > { %v1496_v43 = vpop.f32.mrf.mxu2  ;;  %v1927_v12 = vpop.f32.mrf.mxu3 }
 0x3e6   : > { %v1944_v44 = vadd.f32 %v1927_v12, %v6473_v25  ;;  %v1497_v25 = vadd.f32 %v1496_v43, %v6504_v49  ;;  %v1322_v46 = vpop.f32.mrf.mxu1 }
 0x3e8   : > { %v6551_v53 = vpop.f32.mrf.mxu0  ;;  %v6553_v61 = vadd.f32 %v2032_v37, %v1944_v44  ;;  %v5384_v44 = vld [vmem:[#allocation3 + $0x220] sm:$0xff] }
 0x3ed   : > { %v1498_v15 = vpop.f32.mrf.mxu2  ;;  %v6561_v35 = vpop.f32.mrf.mxu3 }
 0x3ee   : > { %v1499_v0 = vadd.f32 %v1498_v15, %v1309_v2  ;;  %v1324_v7 = vpop.f32.mrf.mxu1  ;;  %v5382_v15 = vld [vmem:[#allocation3 + $0x210] sm:$0xff] }
 0x3f0   : > { %v2162_v32 = vpack.c.bf16 %v1499_v0, %v1497_v25  ;;  %v2037_v60 = vpop.f32.mrf.mxu0  ;;  %v5381_v25 = vld [vmem:[#allocation3 + $0x208] sm:$0xff] }
 0x3f2   : > { %1540 = vmatmul.bf16.gmra.mxu2 %v4385_v28  ;;  %2246 = vmatmul.bf16.gmra.mxu0 %v2162_v32 }
 0x3f5   : > { %v1501_v38 = vpop.f32.mrf.mxu2  ;;  %v1932_v1 = vpop.f32.mrf.mxu3 }
 0x3f6   : > { %v1946_v3 = vadd.f32 %v1932_v1, %v6493_v45  ;;  %v1502_v2 = vadd.f32 %v1501_v38, %v1312_v47  ;;  %v5483_v45 = vld [vmem:[%s7079_s7 + $0x2f0] sm:$0xff]  ;;  %v1327_v8 = vpop.f32.mrf.mxu1 }
 0x3f7   : > { %3774 = vmatpush.bf16.msrb.mxu2 %v5483_v45 }
 0x3f8   : > { %v6565_v4 = vadd.f32 %v2037_v60, %v1946_v3  ;;  %v6567_v6 = vpop.f32.mrf.mxu0  ;;  %v5380_v60 = vld [vmem:[#allocation3 + $0x200] sm:$0xff] }
 0x3fd   : > { %v1503_v39 = vpop.f32.mrf.mxu2  ;;  %v6569_v49 = vpop.f32.mrf.mxu3 }
 0x3fe   : > { %v1504_v11 = vadd.f32 %v1503_v39, %v1314_v62  ;;  %v5475_v62 = vld [vmem:[%s7079_s7 + $0x2b0] sm:$0xff]  ;;  %v1329_v55 = vpop.f32.mrf.mxu1 }
 0x3ff   : > { %3761 = vmatpush.bf16.msrb.mxu1 %v5475_v62 }
 0x400   : > { %v2163_v50 = vpack.c.bf16 %v1504_v11, %v1502_v2  ;;  %v2042_v19 = vpop.f32.mrf.mxu0 }
 0x402   : > { %2251 = vmatmul.bf16.gmra.mxu0 %v2163_v50 }
 0x405   : > { %v1506_v33 = vpop.f32.mrf.mxu2  ;;  %v1937_v41 = vpop.f32.mrf.mxu3 }
 0x406   : > { %v1948_v20 = vadd.f32 %v1937_v41, %v6516_v26  ;;  %v1507_v30 = vadd.f32 %v1506_v33, %v1317_v51  ;;  %v5387_v26 = vld [vmem:[#allocation3 + $0x238] sm:$0xff]  ;;  %v1332_v52 = vpop.f32.mrf.mxu1 }
 0x407   : > { %2438 = vmatpush.bf16.msrb.mxu0 %v5387_v26  ;;  %v5482_v26 = vld [vmem:[%s7079_s7 + $0x2e8] sm:$0xff] }
 0x408   : > { %v2053_v54 = vadd.f32 %v2042_v19, %v1948_v20  ;;  %v6587_v19 = vpop.f32.mrf.mxu0  ;;  %3775 = vmatpush.bf16.msrb.mxu2 %v5482_v26 }
 0x40b   : > { %2439 = vmatpush.bf16.msrb.mxu0 %v5386_v58 }
 0x40d   : > { %v1508_v57 = vpop.f32.mrf.mxu2  ;;  %v6575_v21 = vpop.f32.mrf.mxu3 }
 0x40e   : > { %v1509_v47 = vadd.f32 %v1508_v57, %v1319_v59  ;;  %v1334_v0 = vpop.f32.mrf.mxu1 }
 0x40f   : > { %2440 = vmatpush.bf16.msrb.mxu0 %v5385_v5 }
 0x410   : > { %v2265_v63 = vpack.c.bf16 %v1509_v47, %v1507_v30 }
 0x412   : > { %2341 = vmatmul.bf16.vlgmr.msrb.gmra.mxu3 %v2265_v63 }
 0x413   : > { %2441 = vmatpush.bf16.msrb.mxu0 %v5384_v44 }
 0x415   : > { %v1511_v14 = vpop.f32.mrf.mxu2  ;;  %v2132_v42 = vpop.f32.mrf.mxu3 }
 0x416   : > { %v2152_v48 = vadd.f32 %v2132_v42, %v6539_v36  ;;  %v1512_v43 = vadd.f32 %v1511_v14, %v1322_v46  ;;  %v1337_v39 = vpop.f32.mrf.mxu1 }
 0x417   : > { %2442 = vmatpush.bf16.msrb.mxu0 %v5383_v13 }
 0x41b   : > { %2443 = vmatpush.bf16.msrb.mxu0 %v5382_v15 }
 0x41d   : > { %v1513_v37 = vpop.f32.mrf.mxu2  ;;  %v6581_v40 = vpop.f32.mrf.mxu3 }
 0x41e   : > { %v1514_v12 = vadd.f32 %v1513_v37, %v1324_v7  ;;  %v1339_v33 = vpop.f32.mrf.mxu1 }
 0x41f   : > { %2444 = vmatpush.bf16.msrb.mxu0 %v5381_v25 }
 0x420   : > { %v2266_v51 = vpack.c.bf16 %v1514_v12, %v1512_v43 }
 0x422   : > { %2346 = vmatmul.bf16.gmra.mxu3 %v2266_v51 }
 0x423   : > { %2445 = vmatpush.bf16.msrb.mxu0 %v5380_v60 }
 0x425   : > { %v1516_v34 = vpop.f32.mrf.mxu2  ;;  %v2137_v16 = vpop.f32.mrf.mxu3 }
 0x426   : > { %v2154_v36 = vadd.f32 %v2137_v16, %v6553_v61  ;;  %v1517_v32 = vadd.f32 %v1516_v34, %v1327_v8  ;;  %v1342_v57 = vpop.f32.mrf.mxu1  ;;  %v1842_v16 = vadd.f32 %v6501_v18, %v6418_v10 }
 0x42d   : > { %v1518_v28 = vpop.f32.mrf.mxu2  ;;  %v6584_v56 = vpop.f32.mrf.mxu3 }
 0x42e   : > { %v1519_v59 = vadd.f32 %v1518_v28, %v1329_v55  ;;  %v1344_v14 = vpop.f32.mrf.mxu1  ;;  %v1947_v28 = vadd.f32 %v6569_v49, %v1842_v16 }
 0x430   : > { %v2267_v38 = vpack.c.bf16 %v1519_v59, %v1517_v32 }
 0x432   : > { %2351 = vmatmul.bf16.gmra.mxu3 %v2267_v38 }
 0x435   : > { %v1521_v1 = vpop.f32.mrf.mxu2  ;;  %v2142_v3 = vpop.f32.mrf.mxu3 }
 0x436   : > { %v2156_v46 = vadd.f32 %v2142_v3, %v6565_v4  ;;  %v1522_v11 = vadd.f32 %v1521_v1, %v1332_v52  ;;  %v1347_v43 = vpop.f32.mrf.mxu1 }
 0x43d   : > { %v1523_v61 = vpop.f32.mrf.mxu2  ;;  %v2144_v2 = vpop.f32.mrf.mxu3 }
 0x43e   : > { %v1524_v50 = vadd.f32 %v1523_v61, %v1334_v0  ;;  %v1349_v13 = vpop.f32.mrf.mxu1 }
 0x440   : > { %v2268_v7 = vpack.c.bf16 %v1524_v50, %v1522_v11 }
 0x442   : > { %2356 = vmatmul.bf16.gmra.mxu3 %v2268_v7 }
 0x445   : > { %v1526_v41 = vpop.f32.mrf.mxu2  ;;  %v2147_v20 = vpop.f32.mrf.mxu3 }
 0x446   : > { %v2158_v45 = vadd.f32 %v2147_v20, %v2053_v54  ;;  %v1527_v47 = vadd.f32 %v1526_v41, %v1337_v39  ;;  %v5474_v54 = vld [vmem:[%s7079_s7 + $0x2a8] sm:$0xff]  ;;  %v1352_v60 = vpop.f32.mrf.mxu1 }
 0x447   : > { %3762 = vmatpush.bf16.msrb.mxu1 %v5474_v54 }
 0x44d   : > { %v1528_v30 = vpop.f32.mrf.mxu2  ;;  %v6603_v49 = vpop.f32.mrf.mxu3 }
 0x44e   : > { %v1529_v8 = vadd.f32 %v1528_v30, %v1339_v33  ;;  %v1354_v61 = vpop.f32.mrf.mxu1 }
 0x44f   : > { %v2237_v63 = vpop.f32.mrf.mxu0 }
 0x450   : > { %v2370_v62 = vpack.c.bf16 %v1529_v8, %v1527_v47  ;;  %v2257_v4 = vadd.f32 %v2237_v63, %v2152_v48 }
 0x452   : > { %2446 = vmatmul.bf16.vlgmr.msrb.gmra.mxu0 %v2370_v62 }
 0x455   : > { %v1531_v42 = vpop.f32.mrf.mxu2 }
 0x456   : > { %v1532_v5 = vadd.f32 %v1531_v42, %v1342_v57 }
 0x457   : > { %v2239_v58 = vpop.f32.mrf.mxu0 }
 0x45d   : > { %v1533_v55 = vpop.f32.mrf.mxu2 }
 0x45e   : > { %v1534_v37 = vadd.f32 %v1533_v55, %v1344_v14  ;;  %v6621_v14 = vld [vmem:[%s7077_s5] ss:$0 sm:$0xff] }
 0x45f   : > { %v2242_v12 = vpop.f32.mrf.mxu0 }
 0x460   : > { %v2371_v48 = vpack.c.bf16 %v1534_v37, %v1532_v5  ;;  %v2259_v44 = vadd.f32 %v2242_v12, %v2154_v36  ;;  %v2052_v36 = vadd.f32 %v6567_v6, %v1947_v28  ;;  %v5481_v6 = vld [vmem:[%s7079_s7 + $0x2e0] sm:$0xff] }
 0x461   : > { %3776 = vmatpush.bf16.msrb.mxu2 %v5481_v6 }
 0x462   : > { %2451 = vmatmul.bf16.gmra.mxu0 %v2371_v48  ;;  %v2157_v1 = vadd.f32 %v2144_v2, %v2052_v36  ;;  %v5473_v2 = vld [vmem:[%s7079_s7 + $0x2a0] sm:$0xff] }
 0x463   : > { %3763 = vmatpush.bf16.msrb.mxu1 %v5473_v2 }
 0x465   : > { %v1536_v51 = vpop.f32.mrf.mxu2 }
 0x466   : > { %v1537_v15 = vadd.f32 %v1536_v51, %v1347_v43 }
 0x467   : > { %v2244_v52 = vpop.f32.mrf.mxu0 }
 0x46d   : > { %v1538_v34 = vpop.f32.mrf.mxu2 }
 0x46e   : > { %v1539_v25 = vadd.f32 %v1538_v34, %v1349_v13 }
 0x46f   : > { %v2247_v0 = vpop.f32.mrf.mxu0 }
 0x470   : > { %v2372_v32 = vpack.c.bf16 %v1539_v25, %v1537_v15  ;;  %v6598_v59 = vadd.f32 %v2247_v0, %v2156_v46 }
 0x472   : > { %2456 = vmatmul.bf16.gmra.mxu0 %v2372_v32 }
 0x475   : > { %v1541_v38 = vpop.f32.mrf.mxu2 }
 0x476   : > { %v1542_v50 = vadd.f32 %v1541_v38, %v1352_v60 }
 0x477   : > { %v2249_v3 = vpop.f32.mrf.mxu0 }
 0x478   : > { %v2262_v39 = vadd.f32 %v2249_v3, %v2157_v1 }
 0x47d   : > { %v1543_v11 = vpop.f32.mrf.mxu2 }
 0x47e   : > { %v1544_v10 = vadd.f32 %v1543_v11, %v1354_v61 }
 0x47f   : > { %v2252_v18 = vpop.f32.mrf.mxu0 }
 0x480   : > { %v2373_v7 = vpack.c.bf16 %v1544_v10, %v1542_v50  ;;  %v6601_v33 = vadd.f32 %v2252_v18, %v2158_v45  ;;  %v1838_v45 = vadd.f32 %v6461_v9, %v6370_v31  ;;  %v1840_v9 = vadd.f32 %v6481_v22, %v6394_v23  ;;  %v5480_v23 = vld [vmem:[%s7079_s7 + $0x2d8] sm:$0xff] }
 0x481   : > { %3777 = vmatpush.bf16.msrb.mxu2 %v5480_v23  ;;  %v1844_v50 = vadd.f32 %v6527_v27, %v6442_v29  ;;  %v5404_v29 = vld [vmem:[%s7079_s7 + $0x78] sm:$0xff]  ;;  %v5391_v23 = vld [vmem:[%s7079_s7 + $0x10] sm:$0xff] }
 0x482   : > { %2461 = vmatmul.bf16.gmra.mxu0 %v2373_v7  ;;  %v1943_v30 = vadd.f32 %v6547_v17, %v1838_v45  ;;  %v1945_v5 = vadd.f32 %v6561_v35, %v1840_v9  ;;  %v5397_v9 = vld [vmem:[%s7079_s7 + $0x40] sm:$0xff] }
 0x483   : > { %v1949_v18 = vadd.f32 %v6575_v21, %v1844_v50  ;;  %3643 = vmatpush.bf16.msra.mxu0 %v5404_v29  ;;  %v5413_v50 = vld [vmem:[%s7079_s7 + $0xc0] sm:$0xff]  ;;  %v5502_v29 = vld [vmem:[%s7079_s7 + $0x388] sm:$0xff] }
 0x484   : > { %v2048_v8 = vadd.f32 %v6537_v24, %v1943_v30  ;;  %v2050_v12 = vadd.f32 %v6551_v53, %v1945_v5  ;;  %v5395_v5 = vld [vmem:[%s7079_s7 + $0x30] sm:$0xff] }
 0x485   : > { %v2054_v2 = vadd.f32 %v6587_v19, %v1949_v18  ;;  %v5514_v18 = vld [vmem:[%s7079_s7 + $0x3e8] sm:$0xff] }
 0x486   : > { %v2155_v48 = vadd.f32 %v6584_v56, %v2050_v12  ;;  %v5472_v56 = vld [vmem:[%s7079_s7 + $0x298] sm:$0xff]  ;;  %v5418_v12 = vld [vmem:[%s7079_s7 + $0xe8] sm:$0xff] }
 0x487   : > { %v6611_v20 = vpop.f32.mrf.mxu0  ;;  %3764 = vmatpush.bf16.msrb.mxu1 %v5472_v56  ;;  %v2159_v27 = vadd.f32 %v6603_v49, %v2054_v2  ;;  %v5407_v56 = vld [vmem:[%s7079_s7 + $0x90] sm:$0xff] }
 0x488   : > { %v2260_v13 = vadd.f32 %v2244_v52, %v2155_v48  ;;  %v5393_v48 = vld [vmem:[%s7079_s7 + $0x20] sm:$0xff] }
 0x489   : > { %v2264_v30 = vadd.f32 %v6611_v20, %v2159_v27 }
 0x495   : > { %v2342_v46 = vpop.f32.mrf.mxu3 }
 0x496   : > { %v2362_v41 = vadd.f32 %v2342_v46, %v2257_v4  ;;  %v2153_v4 = vadd.f32 %v6581_v40, %v2048_v8  ;;  %v5402_v8 = vld [vmem:[%s7079_s7 + $0x68] sm:$0xff] }
 0x498   : > { %v2258_v26 = vadd.f32 %v2239_v58, %v2153_v4  ;;  %v5401_v4 = vld [vmem:[%s7079_s7 + $0x60] sm:$0xff] }
 0x49d   : > { %v2344_v57 = vpop.f32.mrf.mxu3 }
 0x49e   : > { %v2363_v42 = vadd.f32 %v2344_v57, %v2258_v26  ;;  %v5403_v57 = vld [vmem:[%s7079_s7 + $0x70] sm:$0xff] }
 0x49f   : > { %3644 = vmatpush.bf16.msra.mxu0 %v5403_v57 }
 0x4a3   : > { %3645 = vmatpush.bf16.msra.mxu0 %v5402_v8  ;;  %v5501_v8 = vld [vmem:[%s7079_s7 + $0x380] sm:$0xff] }
 0x4a5   : > { %v2347_v62 = vpop.f32.mrf.mxu3 }
 0x4a6   : > { %v2364_v51 = vadd.f32 %v2347_v62, %v2259_v44 }
 0x4a7   : > { %3646 = vmatpush.bf16.msra.mxu0 %v5401_v4 }
 0x4ad   : > { %v2349_v17 = vpop.f32.mrf.mxu3 }
 0x4ae   : > { %v2365_v16 = vadd.f32 %v2349_v17, %v2260_v13  ;;  %v5420_v17 = vld [vmem:[%s7079_s7 + $0xf8] sm:$0xff] }
 0x4af   : > { %v5392_v13 = vld [vmem:[%s7079_s7 + $0x18] sm:$0xff] }
 0x4b5   : > { %v2352_v22 = vpop.f32.mrf.mxu3 }
 0x4b6   : > { %v2366_v60 = vadd.f32 %v2352_v22, %v6598_v59  ;;  %v5479_v59 = vld [vmem:[%s7079_s7 + $0x2d0] sm:$0xff]  ;;  %v5390_v22 = vld [vmem:[%s7079_s7 + $0x8] sm:$0xff] }
 0x4b7   : > { %3778 = vmatpush.bf16.msrb.mxu2 %v5479_v59  ;;  %v5503_v59 = vld [vmem:[%s7079_s7 + $0x390] sm:$0xff] }
 0x4bd   : > { %v2354_v52 = vpop.f32.mrf.mxu3 }
 0x4be   : > { %v2367_v38 = vadd.f32 %v2354_v52, %v2262_v39  ;;  %v5471_v39 = vld [vmem:[%s7079_s7 + $0x290] sm:$0xff]  ;;  %v5469_v52 = vld [vmem:[%s7079_s7 + $0x280] sm:$0xff] }
 0x4bf   : > { %3765 = vmatpush.bf16.msrb.mxu1 %v5471_v39  ;;  %v5511_v39 = vld [vmem:[%s7079_s7 + $0x3d0] sm:$0xff] }
 0x4c5   : > { %v2357_v11 = vpop.f32.mrf.mxu3 }
 0x4c6   : > { %v2368_v21 = vadd.f32 %v2357_v11, %v6601_v33  ;;  %v5515_v11 = vld [vmem:[%s7079_s7 + $0x3f0] sm:$0xff] }
 0x4cd   : > { %v2359_v45 = vpop.f32.mrf.mxu3 }
 0x4ce   : > { %v2369_v19 = vadd.f32 %v2359_v45, %v2264_v30  ;;  %v5510_v45 = vld [vmem:[%s7079_s7 + $0x3c8] sm:$0xff] }
 0x4cf   : > { %v2447_v47 = vpop.f32.mrf.mxu0 }
 0x4d0   : > { %v2467_v63 = vadd.f32 %v2447_v47, %v2362_v41 }
 0x4d2   : > { %v2479_v55 = vadd.f32 %v6621_v14, %v2467_v63 }
 0x4d4   : > { %v2487_v40 = vmax.f32 %v2479_v55, 0.0  ;;  %v5399_v55 = vld [vmem:[%s7079_s7 + $0x50] sm:$0xff] }
 0x4d7   : > { %v2449_v54 = vpop.f32.mrf.mxu0 }
 0x4d8   : > { %v2468_v31 = vadd.f32 %v2449_v54, %v2363_v42  ;;  %v5400_v54 = vld [vmem:[%s7079_s7 + $0x58] sm:$0xff] }
 0x4d9   : > { %3647 = vmatpush.bf16.msra.mxu0 %v5400_v54 }
 0x4da   : > { %v2480_v24 = vadd.f32 %v6621_v14, %v2468_v31  ;;  %v5396_v31 = vld [vmem:[%s7079_s7 + $0x38] sm:$0xff] }
 0x4dc   : > { %v2488_v58 = vmax.f32 %v2480_v24, 0.0  ;;  %v5388_v24 = vld [vmem:[%s7078_s6] sm:$0xff] }
 0x4dd   : > { %3648 = vmatpush.bf16.msra.mxu0 %v5399_v55 }
 0x4de   : > { %v6628_v37 = vpack.c.bf16 %v2488_v58, %v2487_v40  ;;  %v5478_v40 = vld [vmem:[%s7079_s7 + $0x2c8] sm:$0xff]  ;;  %v5419_v58 = vld [vmem:[%s7079_s7 + $0xf0] sm:$0xff] }
 0x4df   : > { %v2452_v43 = vpop.f32.mrf.mxu0  ;;  %3779 = vmatpush.bf16.msrb.mxu2 %v5478_v40  ;;  %v5427_v40 = vld [vmem:[%s7079_s7 + $0x130] sm:$0xff] }
 0x4e0   : > { %v2469_v34 = vadd.f32 %v2452_v43, %v2364_v51  ;;  %v5470_v43 = vld [vmem:[%s7079_s7 + $0x288] sm:$0xff]  ;;  %v5417_v51 = vld [vmem:[%s7079_s7 + $0xe0] sm:$0xff] }
 0x4e1   : > { %3766 = vmatpush.bf16.msrb.mxu1 %v5470_v43  ;;  %v5434_v43 = vld [vmem:[%s7079_s7 + $0x168] sm:$0xff] }
 0x4e2   : > { %v2481_v15 = vadd.f32 %v6621_v14, %v2469_v34  ;;  %v5683_v34 = vmov 0.0  }
 0x4e3   : > { %402 = vst [vmem:[#allocation2 + $0x30] sm:$0xff] %v5683_v34 }
 0x4e4   : > { %v2489_v28 = vmax.f32 %v2481_v15, 0.0  ;;  %403 = vst [vmem:[#allocation2] sm:$0xff] %v5683_v34  ;;  %v5411_v15 = vld [vmem:[%s7079_s7 + $0xb0] sm:$0xff] }
 0x4e5   : > { %404 = vst [vmem:[#allocation2 + $0x58] sm:$0xff] %v5683_v34  ;;  %3767 = vmatpush.bf16.msrb.mxu1 %v5469_v52  ;;  %v5430_v52 = vld [vmem:[%s7079_s7 + $0x148] sm:$0xff] }
 0x4e6   : > { %405 = vst [vmem:[#allocation2 + $0x18] sm:$0xff] %v5683_v34 }
 0x4e7   : > { %v2454_v35 = vpop.f32.mrf.mxu0  ;;  %406 = vst [vmem:[#allocation2 + $0x50] sm:$0xff] %v5683_v34 }
 0x4e8   : > { %v2470_v25 = vadd.f32 %v2454_v35, %v2365_v16  ;;  %407 = vst [vmem:[#allocation2 + $0x68] sm:$0xff] %v5683_v34  ;;  %v5389_v16 = vld [vmem:[%s7079_s7] sm:$0xff]  ;;  %v5412_v35 = vld [vmem:[%s7079_s7 + $0xb8] sm:$0xff] }
 0x4e9   : > { %408 = vst [vmem:[#allocation2 + $0x8] sm:$0xff] %v5683_v34 }
 0x4ea   : > { %v2482_v0 = vadd.f32 %v6621_v14, %v2470_v25  ;;  %409 = vst [vmem:[#allocation2 + $0x48] sm:$0xff] %v5683_v34  ;;  %v5410_v25 = vld [vmem:[%s7079_s7 + $0xa8] sm:$0xff] }
 0x4eb   : > { %410 = vst [vmem:[#allocation2 + $0x40] sm:$0xff] %v5683_v34 }
 0x4ec   : > { %v2490_v53 = vmax.f32 %v2482_v0, 0.0  ;;  %411 = vst [vmem:[#allocation2 + $0x20] sm:$0xff] %v5683_v34  ;;  %v5409_v0 = vld [vmem:[%s7079_s7 + $0xa0] sm:$0xff] }
 0x4ed   : > { %412 = vst [vmem:[#allocation2 + $0x10] sm:$0xff] %v5683_v34 }
 0x4ee   : > { %v2496_v44 = vpack.c.bf16 %v2490_v53, %v2489_v28  ;;  %413 = vst [vmem:[#allocation2 + $0x38] sm:$0xff] %v5683_v34  ;;  %v5408_v28 = vld [vmem:[%s7079_s7 + $0x98] sm:$0xff] }
 0x4ef   : > { %v2457_v32 = vpop.f32.mrf.mxu0  ;;  %414 = vst [vmem:[#allocation2 + $0x60] sm:$0xff] %v5683_v34  ;;  %v5416_v53 = vld [vmem:[%s7079_s7 + $0xd8] sm:$0xff] }
 0x4f0   : > { %v2471_v36 = vadd.f32 %v2457_v32, %v2366_v60  ;;  %415 = vst [vmem:[#allocation2 + $0x70] sm:$0xff] %v5683_v34  ;;  %v5477_v32 = vld [vmem:[%s7079_s7 + $0x2c0] sm:$0xff]  ;;  %v5406_v60 = vld [vmem:[%s7079_s7 + $0x88] sm:$0xff] }
 0x4f1   : > { %416 = vst [vmem:[#allocation2 + $0x78] sm:$0xff] %v5683_v34  ;;  %3780 = vmatpush.bf16.msrb.mxu2 %v5477_v32 }
 0x4f2   : > { %v2483_v3 = vadd.f32 %v6621_v14, %v2471_v36  ;;  %417 = vst [vmem:[#allocation2 + $0x28] sm:$0xff] %v5683_v34  ;;  %v5508_v36 = vld [vmem:[%s7079_s7 + $0x3b8] sm:$0xff]  ;;  %v5425_v34 = vld [vmem:[%s7079_s7 + $0x120] sm:$0xff] }
 0x4f3   : > { %3812 = vmatpush.bf16.msra.mxu1 %v5508_v36 }
 0x4f4   : > { %v2491_v7 = vmax.f32 %v2483_v3, 0.0  ;;  %v5405_v3 = vld [vmem:[%s7079_s7 + $0x80] sm:$0xff] }
 0x4f7   : > { %v2459_v1 = vpop.f32.mrf.mxu0 }
 0x4f8   : > { %v2472_v61 = vadd.f32 %v2459_v1, %v2367_v38  ;;  %v5516_v38 = vld [vmem:[%s7079_s7 + $0x3f8] sm:$0xff]  ;;  %v5414_v1 = vld [vmem:[%s7079_s7 + $0xc8] sm:$0xff] }
 0x4f9   : > { %3825 = vmatpush.bf16.msra.mxu2 %v5516_v38  ;;  %v5421_v38 = vld [vmem:[%s7079_s7 + $0x100] sm:$0xff] }
 0x4fa   : > { %v2484_v10 = vadd.f32 %v6621_v14, %v2472_v61  ;;  %v5507_v61 = vld [vmem:[%s7079_s7 + $0x3b0] sm:$0xff] }
 0x4fb   : > { %3813 = vmatpush.bf16.msra.mxu1 %v5507_v61  ;;  %v5452_v61 = vld [vmem:[%s7079_s7 + $0x1f8] sm:$0xff] }
 0x4fc   : > { %v2492_v46 = vmax.f32 %v2484_v10, 0.0  ;;  %v5506_v10 = vld [vmem:[%s7079_s7 + $0x3a8] sm:$0xff] }
 0x4fd   : > { %3826 = vmatpush.bf16.msra.mxu2 %v5515_v11 }
 0x4fe   : > { %v2497_v41 = vpack.c.bf16 %v2492_v46, %v2491_v7  ;;  %v5505_v7 = vld [vmem:[%s7079_s7 + $0x3a0] sm:$0xff] }
 0x4ff   : > { %v2462_v6 = vpop.f32.mrf.mxu0  ;;  %3814 = vmatpush.bf16.msra.mxu1 %v5506_v10  ;;  %v5513_v46 = vld [vmem:[%s7079_s7 + $0x3e0] sm:$0xff] }
 0x500   : > { %v2473_v47 = vadd.f32 %v2462_v6, %v2368_v21  ;;  %v5512_v6 = vld [vmem:[%s7079_s7 + $0x3d8] sm:$0xff] }
 0x501   : > { %3827 = vmatpush.bf16.msra.mxu2 %v5514_v18  ;;  %v5443_v18 = vld [vmem:[%s7079_s7 + $0x1b0] sm:$0xff] }
 0x502   : > { %v2485_v49 = vadd.f32 %v6621_v14, %v2473_v47 }
 0x503   : > { %3815 = vmatpush.bf16.msra.mxu1 %v5505_v7 }
 0x504   : > { %v2493_v26 = vmax.f32 %v2485_v49, 0.0  ;;  %v5509_v49 = vld [vmem:[%s7079_s7 + $0x3c0] sm:$0xff] }
 0x505   : > { %3828 = vmatpush.bf16.msra.mxu2 %v5513_v46  ;;  %v5451_v46 = vld [vmem:[%s7079_s7 + $0x1f0] sm:$0xff] }
 0x507   : > { %v2464_v63 = vpop.f32.mrf.mxu0 }
 0x508   : > { %v2474_v62 = vadd.f32 %v2464_v63, %v2369_v19 }
 0x509   : > { %3829 = vmatpush.bf16.msra.mxu2 %v5512_v6  ;;  %v5450_v6 = vld [vmem:[%s7079_s7 + $0x1e8] sm:$0xff] }
 0x50a   : > { %v2486_v33 = vadd.f32 %v6621_v14, %v2474_v62  ;;  %v5398_v14 = vld [vmem:[%s7079_s7 + $0x48] sm:$0xff] }
 0x50b   : > { %3649 = vmatpush.bf16.msra.mxu0 %v5398_v14 }
 0x50c   : > { %v2494_v20 = vmax.f32 %v2486_v33, 0.0 }
 0x50d   : > { %3830 = vmatpush.bf16.msra.mxu2 %v5511_v39  ;;  %v5449_v39 = vld [vmem:[%s7079_s7 + $0x1e0] sm:$0xff] }
 0x50e   : > { %v2498_v42 = vpack.c.bf16 %v2494_v20, %v2493_v26 }
 0x50f   : > { %3650 = vmatpush.bf16.msra.mxu0 %v5397_v9 }
 0x510   : > { %2514 = vmatpush.bf16.msra.mxu3 %v2498_v42  ;;  %v5428_v42 = vld [vmem:[%s7079_s7 + $0x138] sm:$0xff] }
 0x511   : > { %3831 = vmatpush.bf16.msra.mxu2 %v5510_v45  ;;  %v5446_v45 = vld [vmem:[%s7079_s7 + $0x1c8] sm:$0xff] }
 0x513   : > { %3669 = vmatpush.bf16.msrb.mxu0 %v5420_v17 }
 0x514   : > { %2515 = vmatpush.bf16.msra.mxu3 %v2497_v41  ;;  %v5504_v41 = vld [vmem:[%s7079_s7 + $0x398] sm:$0xff] }
 0x515   : > { %3816 = vmatpush.bf16.msra.mxu1 %v5504_v41  ;;  %3832 = vmatpush.bf16.msra.mxu2 %v5509_v49  ;;  %v5442_v41 = vld [vmem:[%s7079_s7 + $0x1a8] sm:$0xff] }
 0x517   : > { %3670 = vmatpush.bf16.msrb.mxu0 %v5419_v58  ;;  %v5435_v58 = vld [vmem:[%s7079_s7 + $0x170] sm:$0xff] }
 0x518   : > { %2516 = vmatpush.bf16.msra.mxu3 %v2496_v44  ;;  %v5415_v44 = vld [vmem:[%s7079_s7 + $0xd0] sm:$0xff] }
 0x519   : > { %3817 = vmatpush.bf16.msra.mxu1 %v5503_v59  ;;  %v5441_v59 = vld [vmem:[%s7079_s7 + $0x1a0] sm:$0xff] }
 0x51b   : > { %3671 = vmatpush.bf16.msrb.mxu0 %v5418_v12 }
 0x51c   : > { %2517 = vmatpush.bf16.msra.mxu3 %v6628_v37  ;;  %v5394_v37 = vld [vmem:[%s7079_s7 + $0x28] sm:$0xff] }
 0x51d   : > { %3818 = vmatpush.bf16.msra.mxu1 %v5502_v29  ;;  %v5448_v29 = vld [vmem:[%s7079_s7 + $0x1d8] sm:$0xff] }
 0x51f   : > { %4678 = vmatmul.msk.bf16.vlgmr.msra.gmra.mxu3 %vm2506_vm1, %v5388_v24  ;;  %3672 = vmatpush.bf16.msrb.mxu0 %v5417_v51 }
 0x520   : > { %3630 = vmatpush.bf16.msrb.mxu3 %v5396_v31  ;;  %v5436_v31 = vld [vmem:[%s7079_s7 + $0x178] sm:$0xff] }
 0x521   : > { %3819 = vmatpush.bf16.msra.mxu1 %v5501_v8 }
 0x523   : > { %3673 = vmatpush.bf16.msrb.mxu0 %v5416_v53  ;;  %v5431_v53 = vld [vmem:[%s7079_s7 + $0x150] sm:$0xff] }
 0x524   : > { %3631 = vmatpush.bf16.msrb.mxu3 %v5395_v5 }
 0x527   : > { %3674 = vmatpush.bf16.msrb.mxu0 %v5415_v44 }
 0x528   : > { %3632 = vmatpush.bf16.msrb.mxu3 %v5394_v37  ;;  %v5426_v37 = vld [vmem:[%s7079_s7 + $0x128] sm:$0xff] }
 0x52b   : > { %3675 = vmatpush.bf16.msrb.mxu0 %v5414_v1  ;;  %v5444_v1 = vld [vmem:[%s7079_s7 + $0x1b8] sm:$0xff] }
 0x52c   : > { %3633 = vmatpush.bf16.msrb.mxu3 %v5393_v48 }
 0x52f   : > { %3676 = vmatpush.bf16.msrb.mxu0 %v5413_v50 }
 0x530   : > { %3634 = vmatpush.bf16.msrb.mxu3 %v5392_v13 }
 0x534   : > { %3635 = vmatpush.bf16.msrb.mxu3 %v5391_v23  ;;  %v5433_v23 = vld [vmem:[%s7079_s7 + $0x160] sm:$0xff] }
 0x538   : > { %3636 = vmatpush.bf16.msrb.mxu3 %v5390_v22 }
 0x53c   : > { %3637 = vmatpush.bf16.msrb.mxu3 %v5389_v16 }
 0x540   : > { %3656 = vmatpush.bf16.msra.mxu3 %v5412_v35  ;;  %v5424_v35 = vld [vmem:[%s7079_s7 + $0x118] sm:$0xff] }
 0x544   : > { %3657 = vmatpush.bf16.msra.mxu3 %v5411_v15 }
 0x548   : > { %3658 = vmatpush.bf16.msra.mxu3 %v5410_v25  ;;  %v5432_v25 = vld [vmem:[%s7079_s7 + $0x158] sm:$0xff] }
 0x54c   : > { %3659 = vmatpush.bf16.msra.mxu3 %v5409_v0 }
 0x550   : > { %3660 = vmatpush.bf16.msra.mxu3 %v5408_v28  ;;  %v5423_v28 = vld [vmem:[%s7079_s7 + $0x110] sm:$0xff] }
 0x554   : > { %3661 = vmatpush.bf16.msra.mxu3 %v5407_v56  ;;  %v5422_v56 = vld [vmem:[%s7079_s7 + $0x108] sm:$0xff] }
 0x558   : > { %3662 = vmatpush.bf16.msra.mxu3 %v5406_v60 }
 0x55c   : > { %3663 = vmatpush.bf16.msra.mxu3 %v5405_v3  ;;  %v5429_v3 = vld [vmem:[%s7079_s7 + $0x140] sm:$0xff] }
 0x5a2   : > { %v2519_v2 = vpop.f32.mrf.mxu3 }
 0x5a3   : > { %2524 = vst [vmem:[#allocation2 + $0x30] sm:$0x1] %v2519_v2  ;;  %v2526_v27 = vrot.slane %v2519_v2, 1  ;;  %v2529_v21 = vrot.slane %v2519_v2, 2  ;;  %v2532_v57 = vrot.slane %v2519_v2, 3  ;;  %v2535_v30 = vrot.slane %v2519_v2, 4 }
 0x5a4   : > { %v2538_v47 = vrot.slane %v2519_v2, 5  ;;  %v2541_v19 = vrot.slane %v2519_v2, 6  ;;  %v2544_v63 = vrot.slane %v2519_v2, 7  ;;  %v5440_v2 = vld [vmem:[%s7079_s7 + $0x198] sm:$0xff] }
 0x5a5   : > { %2528 = vst [vmem:[#allocation2] sm:$0x1] %v2526_v27  ;;  %v5439_v27 = vld [vmem:[%s7079_s7 + $0x190] sm:$0xff] }
 0x5a6   : > { %2531 = vst [vmem:[#allocation2 + $0x58] sm:$0x1] %v2529_v21  ;;  %v5447_v21 = vld [vmem:[%s7079_s7 + $0x1d0] sm:$0xff] }
 0x5a7   : > { %2534 = vst [vmem:[#allocation2 + $0x18] sm:$0x1] %v2532_v57  ;;  %v5438_v57 = vld [vmem:[%s7079_s7 + $0x188] sm:$0xff] }
 0x5a8   : > { %2537 = vst [vmem:[#allocation2 + $0x50] sm:$0x1] %v2535_v30  ;;  %v5437_v30 = vld [vmem:[%s7079_s7 + $0x180] sm:$0xff] }
 0x5a9   : > { %2540 = vst [vmem:[#allocation2 + $0x68] sm:$0x1] %v2538_v47  ;;  %v5460_v47 = vld [vmem:[%s7079_s7 + $0x238] sm:$0xff] }
 0x5aa   : > { %2543 = vst [vmem:[#allocation2 + $0x8] sm:$0x1] %v2541_v19  ;;  %v2521_v62 = vpop.f32.mrf.mxu3  ;;  %v2570_v33 = vld [vmem:[#allocation2 + $0x30] sm:$0xff]  ;;  %v5445_v19 = vld [vmem:[%s7079_s7 + $0x1c0] sm:$0xff] }
 0x5ab   : > { %2546 = vst [vmem:[#allocation2 + $0x48] sm:$0x1] %v2544_v63  ;;  %v2549_v4 = vrot.slane %v2521_v62, 1  ;;  %v2552_v26 = vrot.slane %v2521_v62, 2  ;;  %v2555_v20 = vrot.slane %v2521_v62, 3  ;;  %v2558_v54 = vrot.slane %v2521_v62, 4 }
 0x5ac   : > { %2547 = vst [vmem:[#allocation2 + $0x40] sm:$0x1] %v2521_v62  ;;  %v2586_v55 = vpack.c.bf16 %v2570_v33, %v2570_v33  ;;  %v2571_v14 = vld [vmem:[#allocation2] sm:$0xff]  ;;  %v2561_v9 = vrot.slane %v2521_v62, 5  ;;  %v2564_v17 = vrot.slane %v2521_v62, 6  ;;  %v2567_v5 = vrot.slane %v2521_v62, 7 }
 0x5ad   : > { %2551 = vst [vmem:[#allocation2 + $0x20] sm:$0x1] %v2549_v4  ;;  %v2587_v24 = vpack.c.bf16 %v2571_v14, %v2571_v14  ;;  %v2572_v22 = vld [vmem:[#allocation2 + $0x58] sm:$0xff]  ;;  %v5459_v33 = vld [vmem:[%s7079_s7 + $0x230] sm:$0xff] }
 0x5ae   : > { %2554 = vst [vmem:[#allocation2 + $0x10] sm:$0x1] %v2552_v26  ;;  %3638 = vmatmul.bf16.vlgmr.msrb.gmra.mxu3 %v2586_v55  ;;  %v2573_v16 = vld [vmem:[#allocation2 + $0x18] sm:$0xff]  ;;  %v2588_v15 = vpack.c.bf16 %v2572_v22, %v2572_v22  ;;  %v5467_v26 = vld [vmem:[%s7079_s7 + $0x270] sm:$0xff]  ;;  %v5465_v55 = vld [vmem:[%s7079_s7 + $0x260] sm:$0xff] }
 0x5af   : > { %2557 = vst [vmem:[#allocation2 + $0x38] sm:$0x1] %v2555_v20  ;;  %3682 = vmatpush.bf16.msrb.mxu3 %v5428_v42  ;;  %3651 = vmatmul.bf16.vlgmr.msra.gmra.mxu0 %v2587_v24  ;;  %v2589_v0 = vpack.c.bf16 %v2573_v16, %v2573_v16  ;;  %v2574_v11 = vld [vmem:[#allocation2 + $0x50] sm:$0xff]  ;;  %v5468_v63 = vld [vmem:[%s7079_s7 + $0x278] sm:$0xff]  ;;  %v5458_v20 = vld [vmem:[%s7079_s7 + $0x228] sm:$0xff] }
 0x5b0   : > { %2560 = vst [vmem:[#allocation2 + $0x60] sm:$0x1] %v2558_v54  ;;  %3695 = vmatpush.bf16.msra.mxu0 %v5436_v31  ;;  %v2575_v50 = vld [vmem:[#allocation2 + $0x68] sm:$0xff]  ;;  %v2590_v10 = vpack.c.bf16 %v2574_v11, %v2574_v11  ;;  %v5457_v54 = vld [vmem:[%s7079_s7 + $0x220] sm:$0xff]  ;;  %v5456_v14 = vld [vmem:[%s7079_s7 + $0x218] sm:$0xff] }
 0x5b1   : > { %2563 = vst [vmem:[#allocation2 + $0x70] sm:$0x1] %v2561_v9  ;;  %v2591_v7 = vpack.c.bf16 %v2575_v50, %v2575_v50  ;;  %v2576_v8 = vld [vmem:[#allocation2 + $0x8] sm:$0xff]  ;;  %v5464_v31 = vld [vmem:[%s7079_s7 + $0x258] sm:$0xff]  ;;  %v5455_v9 = vld [vmem:[%s7079_s7 + $0x210] sm:$0xff] }
 0x5b2   : > { %2566 = vst [vmem:[#allocation2 + $0x78] sm:$0x1] %v2564_v17  ;;  %v2577_v49 = vld [vmem:[#allocation2 + $0x48] sm:$0xff]  ;;  %v2592_v62 = vpack.c.bf16 %v2576_v8, %v2576_v8  ;;  %v5463_v24 = vld [vmem:[%s7079_s7 + $0x250] sm:$0xff] }
 0x5b3   : > { %2569 = vst [vmem:[#allocation2 + $0x28] sm:$0x1] %v2567_v5  ;;  %3683 = vmatpush.bf16.msrb.mxu3 %v5427_v40  ;;  %v2593_v4 = vpack.c.bf16 %v2577_v49, %v2577_v49  ;;  %v5466_v42 = vld [vmem:[%s7079_s7 + $0x268] sm:$0xff]  ;;  %v5453_v40 = vld [vmem:[%s7079_s7 + $0x200] sm:$0xff] }
 0x5b4   : > { %3696 = vmatpush.bf16.msra.mxu0 %v5435_v58  ;;  %v5454_v17 = vld [vmem:[%s7079_s7 + $0x208] sm:$0xff]  ;;  %v5492_v58 = vld [vmem:[%s7079_s7 + $0x338] sm:$0xff] }
 0x5b5   : > { %v2580_v12 = vld [vmem:[#allocation2 + $0x10] sm:$0xff]  ;;  %v5462_v5 = vld [vmem:[%s7079_s7 + $0x248] sm:$0xff] }
 0x5b6   : > { %v2596_v48 = vpack.c.bf16 %v2580_v12, %v2580_v12  ;;  %v2581_v51 = vld [vmem:[#allocation2 + $0x38] sm:$0xff]  ;;  %v5490_v22 = vld [vmem:[%s7079_s7 + $0x328] sm:$0xff] }
 0x5b7   : > { %3684 = vmatpush.bf16.msrb.mxu3 %v5426_v37  ;;  %v2597_v13 = vpack.c.bf16 %v2581_v51, %v2581_v51  ;;  %v5461_v37 = vld [vmem:[%s7079_s7 + $0x240] sm:$0xff]  ;;  %v5500_v12 = vld [vmem:[%s7079_s7 + $0x378] sm:$0xff]  ;;  %v5498_v16 = vld [vmem:[%s7079_s7 + $0x368] sm:$0xff] }
 0x5b8   : > { %3697 = vmatpush.bf16.msra.mxu0 %v5434_v43  ;;  %3768 = vmatmul.bf16.vlgmr.msrb.gmra.mxu1 %v2596_v48  ;;  %v2578_v43 = vld [vmem:[#allocation2 + $0x40] sm:$0xff] }
 0x5b9   : > { %3781 = vmatmul.bf16.vlgmr.msrb.gmra.mxu2 %v2597_v13  ;;  %v2584_v44 = vld [vmem:[#allocation2 + $0x78] sm:$0xff]  ;;  %v2579_v48 = vld [vmem:[#allocation2 + $0x20] sm:$0xff]  ;;  %v2594_v51 = vpack.c.bf16 %v2578_v43, %v2578_v43  ;;  %v5491_v13 = vld [vmem:[%s7079_s7 + $0x330] sm:$0xff] }
 0x5ba   : > { %v2585_v32 = vld [vmem:[#allocation2 + $0x28] sm:$0xff]  ;;  %v2600_v60 = vpack.c.bf16 %v2584_v44, %v2584_v44 }
 0x5bb   : > { %3685 = vmatpush.bf16.msrb.mxu3 %v5425_v34  ;;  %v2601_v36 = vpack.c.bf16 %v2585_v32, %v2585_v32  ;;  %v2595_v34 = vpack.c.bf16 %v2579_v48, %v2579_v48  ;;  %v5494_v44 = vld [vmem:[%s7079_s7 + $0x348] sm:$0xff]  ;;  %v5493_v32 = vld [vmem:[%s7079_s7 + $0x340] sm:$0xff] }
 0x5bc   : > { %3698 = vmatpush.bf16.msra.mxu0 %v5433_v23  ;;  %v5499_v23 = vld [vmem:[%s7079_s7 + $0x370] sm:$0xff] }
 0x5be   : > { %3664 = vmatmul.bf16.vlgmr.msra.gmra.mxu3 %v2588_v15  ;;  %v5497_v15 = vld [vmem:[%s7079_s7 + $0x360] sm:$0xff] }
 0x5bf   : > { %3686 = vmatpush.bf16.msrb.mxu3 %v5424_v35  ;;  %3677 = vmatmul.bf16.vlgmr.msrb.gmra.mxu0 %v2589_v0  ;;  %v5489_v35 = vld [vmem:[%s7079_s7 + $0x320] sm:$0xff]  ;;  %v5496_v0 = vld [vmem:[%s7079_s7 + $0x358] sm:$0xff] }
 0x5c0   : > { %3699 = vmatpush.bf16.msra.mxu0 %v5432_v25  ;;  %v5488_v25 = vld [vmem:[%s7079_s7 + $0x318] sm:$0xff] }
 0x5c3   : > { %3687 = vmatpush.bf16.msrb.mxu3 %v5423_v28  ;;  %v5487_v28 = vld [vmem:[%s7079_s7 + $0x310] sm:$0xff] }
 0x5c4   : > { %3700 = vmatpush.bf16.msra.mxu0 %v5431_v53  ;;  %v5495_v53 = vld [vmem:[%s7079_s7 + $0x350] sm:$0xff] }
 0x5c7   : > { %3688 = vmatpush.bf16.msrb.mxu3 %v5422_v56  ;;  %v5486_v56 = vld [vmem:[%s7079_s7 + $0x308] sm:$0xff] }
 0x5c8   : > { %3701 = vmatpush.bf16.msra.mxu0 %v5430_v52  ;;  %3820 = vmatmul.bf16.vlgmr.msra.gmra.mxu1 %v2600_v60  ;;  %v5485_v52 = vld [vmem:[%s7079_s7 + $0x300] sm:$0xff] }
 0x5c9   : > { %3833 = vmatmul.bf16.vlgmr.msra.gmra.mxu2 %v2601_v36  ;;  %v2582_v60 = vld [vmem:[#allocation2 + $0x60] sm:$0xff]  ;;  %v2583_v36 = vld [vmem:[#allocation2 + $0x70] sm:$0xff] }
 0x5cb   : > { %3689 = vmatpush.bf16.msrb.mxu3 %v5421_v38  ;;  %v2598_v38 = vpack.c.bf16 %v2582_v60, %v2582_v60 }
 0x5cc   : > { %3702 = vmatpush.bf16.msra.mxu0 %v5429_v3 }
 0x5ce   : > { %3690 = vmatmul.bf16.vlgmr.msrb.gmra.mxu3 %v2590_v10 }
 0x5cf   : > { %3708 = vmatpush.bf16.msra.mxu3 %v5444_v1  ;;  %3703 = vmatmul.bf16.vlgmr.msra.gmra.mxu0 %v2591_v7  ;;  %v2599_v1 = vpack.c.bf16 %v2583_v36, %v2583_v36 }
 0x5d0   : > { %3721 = vmatpush.bf16.msrb.mxu0 %v5452_v61  ;;  %v5580_v61 = vld [vmem:[%s7080_s8] ss:$0 sm:$0xff] }
 0x5d3   : > { %3709 = vmatpush.bf16.msra.mxu3 %v5443_v18 }
 0x5d4   : > { %3722 = vmatpush.bf16.msrb.mxu0 %v5451_v46 }
 0x5d7   : > { %3710 = vmatpush.bf16.msra.mxu3 %v5442_v41 }
 0x5d8   : > { %3723 = vmatpush.bf16.msrb.mxu0 %v5450_v6 }
 0x5db   : > { %3711 = vmatpush.bf16.msra.mxu3 %v5441_v59 }
 0x5dc   : > { %3724 = vmatpush.bf16.msrb.mxu0 %v5449_v39 }
 0x5df   : > { %3712 = vmatpush.bf16.msra.mxu3 %v5440_v2 }
 0x5e0   : > { %3725 = vmatpush.bf16.msrb.mxu0 %v5448_v29 }
 0x5e3   : > { %3713 = vmatpush.bf16.msra.mxu3 %v5439_v27 }
 0x5e4   : > { %3726 = vmatpush.bf16.msrb.mxu0 %v5447_v21 }
 0x5e7   : > { %3714 = vmatpush.bf16.msra.mxu3 %v5438_v57 }
 0x5e8   : > { %3727 = vmatpush.bf16.msrb.mxu0 %v5446_v45 }
 0x5eb   : > { %3715 = vmatpush.bf16.msra.mxu3 %v5437_v30 }
 0x5ec   : > { %3728 = vmatpush.bf16.msrb.mxu0 %v5445_v19 }
 0x5ee   : > { %3716 = vmatmul.bf16.vlgmr.msra.gmra.mxu3 %v2592_v62 }
 0x5ef   : > { %3734 = vmatpush.bf16.msrb.mxu3 %v5460_v47  ;;  %3729 = vmatmul.bf16.vlgmr.msrb.gmra.mxu0 %v2593_v4 }
 0x5f0   : > { %3747 = vmatpush.bf16.msra.mxu0 %v5468_v63 }
 0x5f3   : > { %3735 = vmatpush.bf16.msrb.mxu3 %v5459_v33 }
 0x5f4   : > { %3748 = vmatpush.bf16.msra.mxu0 %v5467_v26 }
 0x5f7   : > { %3736 = vmatpush.bf16.msrb.mxu3 %v5458_v20 }
 0x5f8   : > { %3749 = vmatpush.bf16.msra.mxu0 %v5466_v42 }
 0x5fb   : > { %3737 = vmatpush.bf16.msrb.mxu3 %v5457_v54  ;;  %v5524_v54 = vld [vmem:[%s7081_s9 + $0x38] sm:$0xff] }
 0x5fc   : > { %3750 = vmatpush.bf16.msra.mxu0 %v5465_v55  ;;  %v5523_v55 = vld [vmem:[%s7081_s9 + $0x30] sm:$0xff] }
 0x5ff   : > { %3738 = vmatpush.bf16.msrb.mxu3 %v5456_v14 }
 0x600   : > { %3751 = vmatpush.bf16.msra.mxu0 %v5464_v31  ;;  %v5522_v31 = vld [vmem:[%s7081_s9 + $0x28] sm:$0xff] }
 0x603   : > { %3739 = vmatpush.bf16.msrb.mxu3 %v5455_v9  ;;  %v5521_v9 = vld [vmem:[%s7081_s9 + $0x20] sm:$0xff] }
 0x604   : > { %3752 = vmatpush.bf16.msra.mxu0 %v5463_v24  ;;  %v5520_v24 = vld [vmem:[%s7081_s9 + $0x18] sm:$0xff] }
 0x607   : > { %3740 = vmatpush.bf16.msrb.mxu3 %v5454_v17 }
 0x608   : > { %3753 = vmatpush.bf16.msra.mxu0 %v5462_v5 }
 0x60b   : > { %3741 = vmatpush.bf16.msrb.mxu3 %v5453_v40  ;;  %v5519_v40 = vld [vmem:[%s7081_s9 + $0x10] sm:$0xff] }
 0x60c   : > { %3754 = vmatpush.bf16.msra.mxu0 %v5461_v37  ;;  %v5518_v37 = vld [vmem:[%s7081_s9 + $0x8] sm:$0xff] }
 0x60e   : > { %3742 = vmatmul.bf16.vlgmr.msrb.gmra.mxu3 %v2594_v51 }
 0x60f   : > { %3786 = vmatpush.bf16.msra.mxu3 %v5492_v58  ;;  %3755 = vmatmul.bf16.vlgmr.msra.gmra.mxu0 %v2595_v34 }
 0x610   : > { %3799 = vmatpush.bf16.msrb.mxu0 %v5500_v12  ;;  %v5517_v12 = vld [vmem:[%s7081_s9] sm:$0xff] }
 0x613   : > { %3787 = vmatpush.bf16.msra.mxu3 %v5491_v13 }
 0x614   : > { %3800 = vmatpush.bf16.msrb.mxu0 %v5499_v23 }
 0x617   : > { %3788 = vmatpush.bf16.msra.mxu3 %v5490_v22 }
 0x618   : > { %3801 = vmatpush.bf16.msrb.mxu0 %v5498_v16 }
 0x61b   : > { %3789 = vmatpush.bf16.msra.mxu3 %v5489_v35 }
 0x61c   : > { %3802 = vmatpush.bf16.msrb.mxu0 %v5497_v15 }
 0x61f   : > { %3790 = vmatpush.bf16.msra.mxu3 %v5488_v25 }
 0x620   : > { %3803 = vmatpush.bf16.msrb.mxu0 %v5496_v0 }
 0x623   : > { %3791 = vmatpush.bf16.msra.mxu3 %v5487_v28 }
 0x624   : > { %3804 = vmatpush.bf16.msrb.mxu0 %v5495_v53 }
 0x627   : > { %3792 = vmatpush.bf16.msra.mxu3 %v5486_v56 }
 0x628   : > { %3805 = vmatpush.bf16.msrb.mxu0 %v5494_v44 }
 0x62b   : > { %3793 = vmatpush.bf16.msra.mxu3 %v5485_v52 }
 0x62c   : > { %3806 = vmatpush.bf16.msrb.mxu0 %v5493_v32  ;;  %v3652_v3 = vpop.f32.mrf.mxu0  ;;  %v5581_v32 = vld [vmem:[%s7082_s10] ss:$0 sm:$0xff] }
 0x62e   : > { %3794 = vmatmul.bf16.vlgmr.msra.gmra.mxu3 %v2598_v38 }
 0x62f   : > { %3807 = vmatmul.bf16.vlgmr.msrb.gmra.mxu0 %v2599_v1  ;;  %3908 = vmatpush.bf16.msrb.mxu3 %v5524_v54 }
 0x631   : > { %v3639_v11 = vpop.f32.mrf.mxu3 }
 0x632   : > { %v3640_v50 = vadd.f32 %v5580_v61, %v3639_v11 }
 0x633   : > { %3909 = vmatpush.bf16.msrb.mxu3 %v5523_v55 }
 0x634   : > { %v3654_v10 = vpop.f32.mrf.mxu0  ;;  %v3653_v18 = vadd.f32 %v3652_v3, %v3640_v50 }
 0x635   : > { %v3769_v7 = vpop.f32.mrf.mxu1 }
 0x637   : > { %3910 = vmatpush.bf16.msrb.mxu3 %v5522_v31 }
 0x639   : > { %v3641_v46 = vpop.f32.mrf.mxu3 }
 0x63b   : > { %3911 = vmatpush.bf16.msrb.mxu3 %v5521_v9 }
 0x63c   : > { %v3782_v41 = vpop.f32.mrf.mxu2  ;;  %v3678_v6 = vpop.f32.mrf.mxu0 }
 0x63d   : > { %v3771_v59 = vpop.f32.mrf.mxu1 }
 0x63f   : > { %3912 = vmatpush.bf16.msrb.mxu3 %v5520_v24 }
 0x641   : > { %v3665_v39 = vpop.f32.mrf.mxu3 }
 0x642   : > { %v3666_v2 = vadd.f32 %v3665_v39, %v3653_v18 }
 0x643   : > { %3913 = vmatpush.bf16.msrb.mxu3 %v5519_v40 }
 0x644   : > { %v3784_v29 = vpop.f32.mrf.mxu2  ;;  %v3680_v27 = vpop.f32.mrf.mxu0  ;;  %v3679_v21 = vadd.f32 %v3678_v6, %v3666_v2 }
 0x645   : > { %v3821_v57 = vpop.f32.mrf.mxu1 }
 0x647   : > { %3914 = vmatpush.bf16.msrb.mxu3 %v5518_v37 }
 0x649   : > { %v3667_v45 = vpop.f32.mrf.mxu3 }
 0x64b   : > { %3915 = vmatpush.bf16.msrb.mxu3 %v5517_v12 }
 0x64c   : > { %v3834_v30 = vpop.f32.mrf.mxu2  ;;  %v3704_v47 = vpop.f32.mrf.mxu0 }
 0x64d   : > { %v3823_v19 = vpop.f32.mrf.mxu1 }
 0x651   : > { %v3691_v8 = vpop.f32.mrf.mxu3 }
 0x652   : > { %v3692_v63 = vadd.f32 %v3691_v8, %v3679_v21 }
 0x654   : > { %v3836_v49 = vpop.f32.mrf.mxu2  ;;  %v3706_v62 = vpop.f32.mrf.mxu0  ;;  %v3705_v33 = vadd.f32 %v3704_v47, %v3692_v63 }
 0x659   : > { %v3693_v4 = vpop.f32.mrf.mxu3 }
 0x66c   : > { %v3730_v26 = vpop.f32.mrf.mxu0 }
 0x671   : > { %v3717_v20 = vpop.f32.mrf.mxu3 }
 0x672   : > { %v3718_v48 = vadd.f32 %v3717_v20, %v3705_v33 }
 0x674   : > { %v3732_v42 = vpop.f32.mrf.mxu0  ;;  %v3731_v51 = vadd.f32 %v3730_v26, %v3718_v48 }
 0x679   : > { %v3719_v14 = vpop.f32.mrf.mxu3 }
 0x68c   : > { %v3756_v17 = vpop.f32.mrf.mxu0 }
 0x691   : > { %v3743_v5 = vpop.f32.mrf.mxu3 }
 0x692   : > { %v3744_v13 = vadd.f32 %v3743_v5, %v3731_v51 }
 0x694   : > { %v3758_v58 = vpop.f32.mrf.mxu0  ;;  %v3757_v34 = vadd.f32 %v3756_v17, %v3744_v13 }
 0x696   : > { %v3770_v22 = vadd.f32 %v3769_v7, %v3757_v34 }
 0x698   : > { %v3783_v16 = vadd.f32 %v3782_v41, %v3770_v22 }
 0x699   : > { %v3745_v43 = vpop.f32.mrf.mxu3 }
 0x6ac   : > { %v3808_v23 = vpop.f32.mrf.mxu0 }
 0x6b1   : > { %v3795_v35 = vpop.f32.mrf.mxu3 }
 0x6b2   : > { %v3796_v15 = vadd.f32 %v3795_v35, %v3783_v16 }
 0x6b4   : > { %v3809_v25 = vadd.f32 %v3808_v23, %v3796_v15  ;;  %v3810_v0 = vpop.f32.mrf.mxu0 }
 0x6b6   : > { %v3822_v28 = vadd.f32 %v3821_v57, %v3809_v25 }
 0x6b8   : > { %v3835_v53 = vadd.f32 %v3834_v30, %v3822_v28 }
 0x6b9   : > { %v3797_v56 = vpop.f32.mrf.mxu3 }
 0x6ba   : > { %v3838_v44 = vmax.f32 %v3835_v53, 0.0 }
 0x6bc   : > { %v3839_v52 = vpack.c.bf16 %v3838_v44, %v3838_v44 }
 0x6be   : > { %3916 = vmatmul.bf16.vlgmr.msrb.gmra.mxu3 %v3839_v52 }
 0x741   : > { %v3917_v60 = vpop.f32.mrf.mxu3 }
 0x742   : > { %v3918_v36 = vadd.f32 %v5581_v32, %v3917_v60 }
 0x744   : > { %3921 = vst [vmem:[%s395_s13] sm:$0x1] %v3918_v36 }
 0x745   : > { %5639 = shalt.err (!%p5636_p8)
}
 0x746   : > { %5529 = dma.vmem_to_hbm [thread:$0]  (%p5782_p5), %s3934_s12, 16, %s3936_s14, %s3923_s15  }
 0x749   : > { %v3919_v38 = vpop.f32.mrf.mxu3 }
 0x74a PF: > { %p5541_p9 = scmp.ge.s32.totalorder %s5678_s20, 2  ;;  %s3947_s22 = sand.u32 1, %s5666_s17  }
 0x74b   : > { %s3948_s25 = scalar_lea.sflag [#allocation5], %s3947_s22 }
 0x74c   : > { %p5536_p10 = pnand %p5541_p9, %p5786_p6 }
 0x74e   : > { %p5537_p11 = pneg %p5536_p10 }
 0x750   : > { %5661 = dma.done.wait (%p5537_p11), %s3948_s25, 16  }
 0x751   : > { %5663 = vsyncadd (%p5537_p11), %s3948_s25, 4294967280  ;;  %p22_p12 = scmp.ge.s32.totalorder %s5769_s23, 4   ;;  %s7090_s17 = smov %s5670_s18 }
 0x752   : > { %s7091_s18 = smov %s5674_s19  ;;  %s7092_s19 = smov %s5780_s26 }
 0x753   : > { %s7093_s20 = smov %s5769_s23  ;;  %24 = sbr.rel (!%p22_p12) target bundleno = 7 (0x7), region = 104 }
 0x758   :  { %3953 = vsyncpa [#allocation4], 1 }
 0x759   :  { %3955 = vsyncpa [#allocation4 + $0x1], 1 }
 0x75a   :  { %3956 = vsyncpa [#allocation5], 1 }
 0x75b   :  { %3958 = vsyncpa [#allocation5 + $0x1], 1 }

</bundles_post_ra>
